<compile_context>
chip_gen: v7x
topology: tpu7x:2x2x1
jax: 0.10.0
libtpu: 0.0.40
codegen_flags: <defaults>
</compile_context>

<pallas_src>
import math

import jax
import jax.numpy as jnp
from jax.experimental import pallas as pl
from jax.experimental.pallas import tpu as pltpu

# ----------------------------- model config (small demo) -------------------------
IN_DIM = 768           # nn.Linear(768, hidden_size)
HIDDEN = 32            # hidden_size (small for the demo)
NUM_HEADS = 4
HEAD_DIM = HIDDEN // NUM_HEADS
FFN_DIM = HIDDEN * 4   # dim_feedforward = hidden_size * 4
NUM_LAYERS = 2         # small number of encoder layers for the demo
LN_EPS = 1e-5
QKV_PAD = 128          # fused q|k|v width (3*HIDDEN = 96) zero-padded to one lane tile


# ----------------------------- fused Pallas kernel -------------------------------
def _layer_norm(y, g, b):
    mu = jnp.mean(y, axis=-1, keepdims=True)
    var = jnp.mean(jnp.square(y - mu), axis=-1, keepdims=True)
    return (y - mu) * jax.lax.rsqrt(var + LN_EPS) * g + b


def _transformer_kernel(x_ref, emb_w_ref, emb_b_ref,
                        wqkv_ref, bqkv_ref, wo_ref, bo_ref,
                        w1_ref, b1_ref, w2_ref, b2_ref,
                        ln1_g_ref, ln1_b_ref, ln2_g_ref, ln2_b_ref,
                        out_w_ref, out_b_ref, o_ref):
    f32 = jnp.float32
    num_layers = wqkv_ref.shape[0]

    # ---- embedding linear: (S, 768) @ (768, H) ----
    h = jnp.dot(x_ref[0], emb_w_ref[...], preferred_element_type=f32) + emb_b_ref[...]

    for li in range(num_layers):                       # static unroll (NUM_LAYERS small)
        # ---- fused, lane-padded QKV projection: (S, H) @ (H, 128) ----
        # 1/sqrt(head_dim) is already folded into the Q slice of wqkv/bqkv.
        qkv = jnp.dot(h, wqkv_ref[li], preferred_element_type=f32) + bqkv_ref[li]
        wo_l = wo_ref[li]                              # (H, H), loaded once per layer

        # ---- multi-head self-attention, statically unrolled over heads -----------
        attn_proj = None
        for hh in range(NUM_HEADS):
            c0 = hh * HEAD_DIM
            q_h = qkv[:, c0:c0 + HEAD_DIM]                             # (S, Dh)
            k_h = qkv[:, HIDDEN + c0:HIDDEN + c0 + HEAD_DIM]           # (S, Dh)
            v_h = qkv[:, 2 * HIDDEN + c0:2 * HIDDEN + c0 + HEAD_DIM]   # (S, Dh)

            s = jnp.dot(q_h, k_h.T, preferred_element_type=f32)        # (S, S)
            s = s - jnp.max(s, axis=-1, keepdims=True)
            p = jnp.exp(s)
            p = p * pl.reciprocal(jnp.sum(p, axis=-1, keepdims=True), approx=True)
            o_h = jnp.dot(p, v_h, preferred_element_type=f32)          # (S, Dh)

            # merge heads through the output projection:
            #   concat_h(o_h) @ Wo == sum_h  o_h @ Wo[h*Dh:(h+1)*Dh, :]
            contrib = jnp.dot(o_h, wo_l[c0:c0 + HEAD_DIM, :],
                              preferred_element_type=f32)              # (S, H)
            attn_proj = contrib if attn_proj is None else attn_proj + contrib
        attn_proj = attn_proj + bo_ref[li]

        # ---- post-norm residual 1 ----
        h = _layer_norm(attn_proj + h, ln1_g_ref[li], ln1_b_ref[li])

        # ---- feed-forward (relu, PyTorch default activation) ----
        ff = jnp.maximum(
            jnp.dot(h, w1_ref[li], preferred_element_type=f32) + b1_ref[li], 0.0)
        ff = jnp.dot(ff, w2_ref[li], preferred_element_type=f32) + b2_ref[li]

        # ---- post-norm residual 2 ----
        h = _layer_norm(ff + h, ln2_g_ref[li], ln2_b_ref[li])

    # ---- output linear: only tensor that touches HBM ----
    o_ref[0] = (jnp.dot(h, out_w_ref[...], preferred_element_type=f32)
                + out_b_ref[...]).astype(o_ref.dtype)


def _full_spec(shape):
    nd = len(shape)
    return pl.BlockSpec(shape, lambda b, _nd=nd: (0,) * _nd)


def simple_transformer_forward(x, params):
    """x: (B, S, 768) -> (B, S, HIDDEN). Matches PyTorch post-norm encoder semantics."""
    B, S, Din = x.shape
    assert Din == IN_DIM

    weights = (
        params["emb_w"], params["emb_b"],
        params["wqkv"], params["bqkv"], params["wo"], params["bo"],
        params["w1"], params["b1"], params["w2"], params["b2"],
        params["ln1_g"], params["ln1_b"], params["ln2_g"], params["ln2_b"],
        params["out_w"], params["out_b"],
    )

    in_specs = [pl.BlockSpec((1, S, Din), lambda b: (b, 0, 0))]
    in_specs += [_full_spec(w.shape) for w in weights]    # constant index maps: 1 fetch

    return pl.pallas_call(
        _transformer_kernel,
        out_shape=jax.ShapeDtypeStruct((B, S, HIDDEN), jnp.float32),
        grid=(B,),
        in_specs=in_specs,
        out_specs=pl.BlockSpec((1, S, HIDDEN), lambda b: (b, 0, 0)),
        compiler_params=pltpu.CompilerParams(
            dimension_semantics=("parallel",)),           # shard batch across TCs
    )(x, *weights)


# ----------------------------- parameters ----------------------------------------
def init_params(key):
    """Returns (kernel-ready fused/padded params, raw per-layer weights for the ref)."""
    def dense(k, din, dout, scale=0.02):
        kw, kb = jax.random.split(k)
        return (scale * jax.random.normal(kw, (din, dout), jnp.float32),
                scale * jax.random.normal(kb, (dout,), jnp.float32))

    keys = jax.random.split(key, 2 + NUM_LAYERS)
    emb_w, emb_b = dense(keys[0], IN_DIM, HIDDEN)
    out_w, out_b = dense(keys[1], HIDDEN, HIDDEN)

    raw = {"emb_w": emb_w, "emb_b": emb_b, "out_w": out_w, "out_b": out_b, "layers": []}
    params = {"emb_w": emb_w, "emb_b": emb_b.reshape(1, HIDDEN),
              "out_w": out_w, "out_b": out_b.reshape(1, HIDDEN)}

    q_scale = 1.0 / math.sqrt(HEAD_DIM)
    wqkv, bqkv, wo_s, bo_s = [], [], [], []
    w1_s, b1_s, w2_s, b2_s = [], [], [], []
    ln1_g, ln1_b, ln2_g, ln2_b = [], [], [], []
    for li in range(NUM_LAYERS):
        lk = jax.random.split(keys[2 + li], 6)
        wq, bq = dense(lk[0], HIDDEN, HIDDEN)
        wk, bk = dense(lk[1], HIDDEN, HIDDEN)
        wv, bv = dense(lk[2], HIDDEN, HIDDEN)
        wo, bo = dense(lk[3], HIDDEN, HIDDEN)
        w1, b1 = dense(lk[4], HIDDEN, FFN_DIM)
        w2, b2 = dense(lk[5], FFN_DIM, HIDDEN)
        g1 = jnp.ones((HIDDEN,), jnp.float32); be1 = jnp.zeros((HIDDEN,), jnp.float32)
        g2 = jnp.ones((HIDDEN,), jnp.float32); be2 = jnp.zeros((HIDDEN,), jnp.float32)

        raw["layers"].append(dict(wq=wq, bq=bq, wk=wk, bk=bk, wv=wv, bv=bv,
                                  wo=wo, bo=bo, w1=w1, b1=b1, w2=w2, b2=b2,
                                  ln1_g=g1, ln1_b=be1, ln2_g=g2, ln2_b=be2))

        # fused q|k|v weight: attention scale folded into Q (one-time cost here),
        # zero-padded on the lane dim to a full 128-wide tile.
        w_qkv = jnp.concatenate([wq * q_scale, wk, wv], axis=1)         # (H, 3H)
        w_qkv = jnp.pad(w_qkv, ((0, 0), (0, QKV_PAD - 3 * HIDDEN)))
        b_qkv = jnp.concatenate([bq * q_scale, bk, bv], axis=0)         # (3H,)
        b_qkv = jnp.pad(b_qkv, (0, QKV_PAD - 3 * HIDDEN)).reshape(1, QKV_PAD)
        wqkv.append(w_qkv); bqkv.append(b_qkv)

        wo_s.append(wo); bo_s.append(bo.reshape(1, HIDDEN))
        w1_s.append(w1); b1_s.append(b1.reshape(1, FFN_DIM))
        w2_s.append(w2); b2_s.append(b2.reshape(1, HIDDEN))
        ln1_g.append(g1.reshape(1, HIDDEN)); ln1_b.append(be1.reshape(1, HIDDEN))
        ln2_g.append(g2.reshape(1, HIDDEN)); ln2_b.append(be2.reshape(1, HIDDEN))

    stack = lambda xs: jnp.stack(xs, axis=0)
    params.update(
        wqkv=stack(wqkv), bqkv=stack(bqkv), wo=stack(wo_s), bo=stack(bo_s),
        w1=stack(w1_s), b1=stack(b1_s), w2=stack(w2_s), b2=stack(b2_s),
        ln1_g=stack(ln1_g), ln1_b=stack(ln1_b),
        ln2_g=stack(ln2_g), ln2_b=stack(ln2_b))
    return params, raw


# ----------------------------- pure-JAX reference (PyTorch semantics) -------------
def reference_forward(x, raw):
    def ln(y, g, b):
        mu = jnp.mean(y, axis=-1, keepdims=True)
        var = jnp.mean(jnp.square(y - mu), axis=-1, keepdims=True)
        return (y - mu) * jax.lax.rsqrt(var + LN_EPS) * g + b

    h = x @ raw["emb_w"] + raw["emb_b"]
    B, S, _ = h.shape
    for layer in raw["layers"]:
        q = (h @ layer["wq"] + layer["bq"]).reshape(B, S, NUM_HEADS, HEAD_DIM)
        k = (h @ layer["wk"] + layer["bk"]).reshape(B, S, NUM_HEADS, HEAD_DIM)
        v = (h @ layer["wv"] + layer["bv"]).reshape(B, S, NUM_HEADS, HEAD_DIM)
        s = jnp.einsum("bqhd,bkhd->bhqk", q, k) / math.sqrt(HEAD_DIM)
        p = jax.nn.softmax(s, axis=-1)
        o = jnp.einsum("bhqk,bkhd->bqhd", p, v).reshape(B, S, HIDDEN)
        attn = o @ layer["wo"] + layer["bo"]
        h = ln(h + attn, layer["ln1_g"], layer["ln1_b"])
        ff = jnp.maximum(h @ layer["w1"] + layer["b1"], 0.0) @ layer["w2"] + layer["b2"]
        h = ln(h + ff, layer["ln2_g"], layer["ln2_b"])
    return h @ raw["out_w"] + raw["out_b"]


# ----------------------------- main -----------------------------------------------
if __name__ == "__main__":
    key = jax.random.PRNGKey(0)
    k_param, k_x = jax.random.split(key)

    B, S = 2, 8
    x = jax.random.normal(k_x, (B, S, IN_DIM), jnp.float32)
    params, raw = init_params(k_param)

    fwd = jax.jit(simple_transformer_forward)
    y = fwd(x, params)
    jax.block_until_ready(y)

    assert y.shape == (B, S, HIDDEN)
    assert bool(jnp.all(jnp.isfinite(y)))

    y_ref = reference_forward(x, raw)
    max_err = float(jnp.max(jnp.abs(y - y_ref)))
    assert max_err < 5e-2, f"kernel/reference mismatch: max abs err {max_err}"
    print("KERNEL_OK")
</pallas_src>

<mosaic_0001>
module attributes {stable_mosaic.version = 11 : i64} {
  func.func @_transformer_kernel(%arg0: i32, %arg1: memref<1x8x768xf32, #tpu.memory_space<vmem>>, %arg2: memref<768x32xf32, #tpu.memory_space<vmem>>, %arg3: memref<1x32xf32, #tpu.memory_space<vmem>>, %arg4: memref<2x32x128xf32, #tpu.memory_space<vmem>>, %arg5: memref<2x1x128xf32, #tpu.memory_space<vmem>>, %arg6: memref<2x32x32xf32, #tpu.memory_space<vmem>>, %arg7: memref<2x1x32xf32, #tpu.memory_space<vmem>>, %arg8: memref<2x32x128xf32, #tpu.memory_space<vmem>>, %arg9: memref<2x1x128xf32, #tpu.memory_space<vmem>>, %arg10: memref<2x128x32xf32, #tpu.memory_space<vmem>>, %arg11: memref<2x1x32xf32, #tpu.memory_space<vmem>>, %arg12: memref<2x1x32xf32, #tpu.memory_space<vmem>>, %arg13: memref<2x1x32xf32, #tpu.memory_space<vmem>>, %arg14: memref<2x1x32xf32, #tpu.memory_space<vmem>>, %arg15: memref<2x1x32xf32, #tpu.memory_space<vmem>>, %arg16: memref<32x32xf32, #tpu.memory_space<vmem>>, %arg17: memref<1x32xf32, #tpu.memory_space<vmem>>, %arg18: memref<1x8x32xf32, #tpu.memory_space<vmem>>) attributes {dimension_semantics = [#tpu.dimension_semantics<parallel>], iteration_bounds = array<i64: 2>, scalar_prefetch = 0 : i64, scratch_operands = 0 : i64, tpu.core_type = #tpu.core_type<tc>, window_params = [{transform_indices = @transform_0, window_bounds = array<i64: 1, 8, 768>}, {pipeline_mode = #tpu.pipeline_mode<synchronous>, transform_indices = @transform_1, window_bounds = array<i64: 768, 32>}, {pipeline_mode = #tpu.pipeline_mode<synchronous>, transform_indices = @transform_2, window_bounds = array<i64: 1, 32>}, {pipeline_mode = #tpu.pipeline_mode<synchronous>, transform_indices = @transform_3, window_bounds = array<i64: 2, 32, 128>}, {pipeline_mode = #tpu.pipeline_mode<synchronous>, transform_indices = @transform_4, window_bounds = array<i64: 2, 1, 128>}, {pipeline_mode = #tpu.pipeline_mode<synchronous>, transform_indices = @transform_5, window_bounds = array<i64: 2, 32, 32>}, {pipeline_mode = #tpu.pipeline_mode<synchronous>, transform_indices = @transform_6, window_bounds = array<i64: 2, 1, 32>}, {pipeline_mode = #tpu.pipeline_mode<synchronous>, transform_indices = @transform_7, window_bounds = array<i64: 2, 32, 128>}, {pipeline_mode = #tpu.pipeline_mode<synchronous>, transform_indices = @transform_8, window_bounds = array<i64: 2, 1, 128>}, {pipeline_mode = #tpu.pipeline_mode<synchronous>, transform_indices = @transform_9, window_bounds = array<i64: 2, 128, 32>}, {pipeline_mode = #tpu.pipeline_mode<synchronous>, transform_indices = @transform_10, window_bounds = array<i64: 2, 1, 32>}, {pipeline_mode = #tpu.pipeline_mode<synchronous>, transform_indices = @transform_11, window_bounds = array<i64: 2, 1, 32>}, {pipeline_mode = #tpu.pipeline_mode<synchronous>, transform_indices = @transform_12, window_bounds = array<i64: 2, 1, 32>}, {pipeline_mode = #tpu.pipeline_mode<synchronous>, transform_indices = @transform_13, window_bounds = array<i64: 2, 1, 32>}, {pipeline_mode = #tpu.pipeline_mode<synchronous>, transform_indices = @transform_14, window_bounds = array<i64: 2, 1, 32>}, {pipeline_mode = #tpu.pipeline_mode<synchronous>, transform_indices = @transform_15, window_bounds = array<i64: 32, 32>}, {pipeline_mode = #tpu.pipeline_mode<synchronous>, transform_indices = @transform_16, window_bounds = array<i64: 1, 32>}, {transform_indices = @transform_17, window_bounds = array<i64: 1, 8, 32>}]} {
    %c0 = arith.constant 0 : index
    %c0_0 = arith.constant 0 : index
    %c0_1 = arith.constant 0 : index
    %0 = vector.load %arg1[%c0, %c0_0, %c0_1] : memref<1x8x768xf32, #tpu.memory_space<vmem>>, vector<1x8x768xf32>
    %1 = vector.shape_cast %0 : vector<1x8x768xf32> to vector<8x768xf32>
    %c0_2 = arith.constant 0 : index
    %c0_3 = arith.constant 0 : index
    %2 = vector.load %arg2[%c0_2, %c0_3] : memref<768x32xf32, #tpu.memory_space<vmem>>, vector<768x32xf32>
    %cst = arith.constant dense<0.000000e+00> : vector<8x32xf32>
    %3 = tpu.matmul %1, %2, %cst {dimension_numbers = #tpu.dot_dimension_numbers<[1], [0], [0], [1], [0, 0, 1, 1], [], []>} : vector<8x768xf32>, vector<768x32xf32>, vector<8x32xf32> -> vector<8x32xf32>
    %c0_4 = arith.constant 0 : index
    %c0_5 = arith.constant 0 : index
    %4 = vector.load %arg3[%c0_4, %c0_5] : memref<1x32xf32, #tpu.memory_space<vmem>>, vector<1x32xf32>
    %5 = vector.broadcast %4 : vector<1x32xf32> to vector<8x32xf32>
    %6 = arith.addf %3, %5 : vector<8x32xf32>
    %c0_6 = arith.constant 0 : index
    %c0_7 = arith.constant 0 : index
    %c0_8 = arith.constant 0 : index
    %7 = vector.load %arg4[%c0_6, %c0_7, %c0_8] : memref<2x32x128xf32, #tpu.memory_space<vmem>>, vector<1x32x128xf32>
    %8 = vector.shape_cast %7 : vector<1x32x128xf32> to vector<32x128xf32>
    %cst_9 = arith.constant dense<0.000000e+00> : vector<8x128xf32>
    %9 = tpu.matmul %6, %8, %cst_9 {dimension_numbers = #tpu.dot_dimension_numbers<[1], [0], [0], [1], [0, 0, 1, 1], [], []>} : vector<8x32xf32>, vector<32x128xf32>, vector<8x128xf32> -> vector<8x128xf32>
    %c0_10 = arith.constant 0 : index
    %c0_11 = arith.constant 0 : index
    %c0_12 = arith.constant 0 : index
    %10 = vector.load %arg5[%c0_10, %c0_11, %c0_12] : memref<2x1x128xf32, #tpu.memory_space<vmem>>, vector<1x1x128xf32>
    %11 = vector.shape_cast %10 : vector<1x1x128xf32> to vector<1x128xf32>
    %12 = vector.broadcast %11 : vector<1x128xf32> to vector<8x128xf32>
    %13 = arith.addf %9, %12 : vector<8x128xf32>
    %c0_13 = arith.constant 0 : index
    %c0_14 = arith.constant 0 : index
    %c0_15 = arith.constant 0 : index
    %14 = vector.load %arg6[%c0_13, %c0_14, %c0_15] : memref<2x32x32xf32, #tpu.memory_space<vmem>>, vector<1x32x32xf32>
    %15 = vector.shape_cast %14 : vector<1x32x32xf32> to vector<32x32xf32>
    %16 = vector.extract_strided_slice %13 {offsets = [0, 0], sizes = [8, 8], strides = [1, 1]} : vector<8x128xf32> to vector<8x8xf32>
    %17 = vector.extract_strided_slice %13 {offsets = [0, 32], sizes = [8, 8], strides = [1, 1]} : vector<8x128xf32> to vector<8x8xf32>
    %18 = vector.extract_strided_slice %13 {offsets = [0, 64], sizes = [8, 8], strides = [1, 1]} : vector<8x128xf32> to vector<8x8xf32>
    %19 = tpu.transpose %17, [1, 0] : vector<8x8xf32> -> vector<8x8xf32>
    %cst_16 = arith.constant dense<0.000000e+00> : vector<8x8xf32>
    %20 = tpu.matmul %16, %19, %cst_16 {dimension_numbers = #tpu.dot_dimension_numbers<[1], [0], [0], [1], [0, 0, 1, 1], [], []>} : vector<8x8xf32>, vector<8x8xf32>, vector<8x8xf32> -> vector<8x8xf32>
    %cst_17 = arith.constant dense<0xFF800000> : vector<8xf32>
    %21 = vector.multi_reduction <maximumf>, %20, %cst_17 [1] : vector<8x8xf32> to vector<8xf32>
    %22 = vector.shape_cast %21 : vector<8xf32> to vector<8x1xf32>
    %23 = vector.broadcast %22 : vector<8x1xf32> to vector<8x8xf32>
    %24 = arith.subf %20, %23 : vector<8x8xf32>
    %25 = math.exp %24 : vector<8x8xf32>
    %cst_18 = arith.constant dense<0.000000e+00> : vector<8xf32>
    %26 = vector.multi_reduction <add>, %25, %cst_18 [1] : vector<8x8xf32> to vector<8xf32>
    %27 = vector.shape_cast %26 : vector<8xf32> to vector<8x1xf32>
    %28 = tpu.reciprocal %27 {approx = true} : vector<8x1xf32> -> vector<8x1xf32>
    %29 = vector.broadcast %28 : vector<8x1xf32> to vector<8x8xf32>
    %30 = arith.mulf %25, %29 : vector<8x8xf32>
    %cst_19 = arith.constant dense<0.000000e+00> : vector<8x8xf32>
    %31 = tpu.matmul %30, %18, %cst_19 {dimension_numbers = #tpu.dot_dimension_numbers<[1], [0], [0], [1], [0, 0, 1, 1], [], []>} : vector<8x8xf32>, vector<8x8xf32>, vector<8x8xf32> -> vector<8x8xf32>
    %32 = vector.extract_strided_slice %15 {offsets = [0, 0], sizes = [8, 32], strides = [1, 1]} : vector<32x32xf32> to vector<8x32xf32>
    %cst_20 = arith.constant dense<0.000000e+00> : vector<8x32xf32>
    %33 = tpu.matmul %31, %32, %cst_20 {dimension_numbers = #tpu.dot_dimension_numbers<[1], [0], [0], [1], [0, 0, 1, 1], [], []>} : vector<8x8xf32>, vector<8x32xf32>, vector<8x32xf32> -> vector<8x32xf32>
    %34 = vector.extract_strided_slice %13 {offsets = [0, 8], sizes = [8, 8], strides = [1, 1]} : vector<8x128xf32> to vector<8x8xf32>
    %35 = vector.extract_strided_slice %13 {offsets = [0, 40], sizes = [8, 8], strides = [1, 1]} : vector<8x128xf32> to vector<8x8xf32>
    %36 = vector.extract_strided_slice %13 {offsets = [0, 72], sizes = [8, 8], strides = [1, 1]} : vector<8x128xf32> to vector<8x8xf32>
    %37 = tpu.transpose %35, [1, 0] : vector<8x8xf32> -> vector<8x8xf32>
    %cst_21 = arith.constant dense<0.000000e+00> : vector<8x8xf32>
    %38 = tpu.matmul %34, %37, %cst_21 {dimension_numbers = #tpu.dot_dimension_numbers<[1], [0], [0], [1], [0, 0, 1, 1], [], []>} : vector<8x8xf32>, vector<8x8xf32>, vector<8x8xf32> -> vector<8x8xf32>
    %cst_22 = arith.constant dense<0xFF800000> : vector<8xf32>
    %39 = vector.multi_reduction <maximumf>, %38, %cst_22 [1] : vector<8x8xf32> to vector<8xf32>
    %40 = vector.shape_cast %39 : vector<8xf32> to vector<8x1xf32>
    %41 = vector.broadcast %40 : vector<8x1xf32> to vector<8x8xf32>
    %42 = arith.subf %38, %41 : vector<8x8xf32>
    %43 = math.exp %42 : vector<8x8xf32>
    %cst_23 = arith.constant dense<0.000000e+00> : vector<8xf32>
    %44 = vector.multi_reduction <add>, %43, %cst_23 [1] : vector<8x8xf32> to vector<8xf32>
    %45 = vector.shape_cast %44 : vector<8xf32> to vector<8x1xf32>
    %46 = tpu.reciprocal %45 {approx = true} : vector<8x1xf32> -> vector<8x1xf32>
    %47 = vector.broadcast %46 : vector<8x1xf32> to vector<8x8xf32>
    %48 = arith.mulf %43, %47 : vector<8x8xf32>
    %cst_24 = arith.constant dense<0.000000e+00> : vector<8x8xf32>
    %49 = tpu.matmul %48, %36, %cst_24 {dimension_numbers = #tpu.dot_dimension_numbers<[1], [0], [0], [1], [0, 0, 1, 1], [], []>} : vector<8x8xf32>, vector<8x8xf32>, vector<8x8xf32> -> vector<8x8xf32>
    %50 = vector.extract_strided_slice %15 {offsets = [8, 0], sizes = [8, 32], strides = [1, 1]} : vector<32x32xf32> to vector<8x32xf32>
    %cst_25 = arith.constant dense<0.000000e+00> : vector<8x32xf32>
    %51 = tpu.matmul %49, %50, %cst_25 {dimension_numbers = #tpu.dot_dimension_numbers<[1], [0], [0], [1], [0, 0, 1, 1], [], []>} : vector<8x8xf32>, vector<8x32xf32>, vector<8x32xf32> -> vector<8x32xf32>
    %52 = arith.addf %33, %51 : vector<8x32xf32>
    %53 = vector.extract_strided_slice %13 {offsets = [0, 16], sizes = [8, 8], strides = [1, 1]} : vector<8x128xf32> to vector<8x8xf32>
    %54 = vector.extract_strided_slice %13 {offsets = [0, 48], sizes = [8, 8], strides = [1, 1]} : vector<8x128xf32> to vector<8x8xf32>
    %55 = vector.extract_strided_slice %13 {offsets = [0, 80], sizes = [8, 8], strides = [1, 1]} : vector<8x128xf32> to vector<8x8xf32>
    %56 = tpu.transpose %54, [1, 0] : vector<8x8xf32> -> vector<8x8xf32>
    %cst_26 = arith.constant dense<0.000000e+00> : vector<8x8xf32>
    %57 = tpu.matmul %53, %56, %cst_26 {dimension_numbers = #tpu.dot_dimension_numbers<[1], [0], [0], [1], [0, 0, 1, 1], [], []>} : vector<8x8xf32>, vector<8x8xf32>, vector<8x8xf32> -> vector<8x8xf32>
    %cst_27 = arith.constant dense<0xFF800000> : vector<8xf32>
    %58 = vector.multi_reduction <maximumf>, %57, %cst_27 [1] : vector<8x8xf32> to vector<8xf32>
    %59 = vector.shape_cast %58 : vector<8xf32> to vector<8x1xf32>
    %60 = vector.broadcast %59 : vector<8x1xf32> to vector<8x8xf32>
    %61 = arith.subf %57, %60 : vector<8x8xf32>
    %62 = math.exp %61 : vector<8x8xf32>
    %cst_28 = arith.constant dense<0.000000e+00> : vector<8xf32>
    %63 = vector.multi_reduction <add>, %62, %cst_28 [1] : vector<8x8xf32> to vector<8xf32>
    %64 = vector.shape_cast %63 : vector<8xf32> to vector<8x1xf32>
    %65 = tpu.reciprocal %64 {approx = true} : vector<8x1xf32> -> vector<8x1xf32>
    %66 = vector.broadcast %65 : vector<8x1xf32> to vector<8x8xf32>
    %67 = arith.mulf %62, %66 : vector<8x8xf32>
    %cst_29 = arith.constant dense<0.000000e+00> : vector<8x8xf32>
    %68 = tpu.matmul %67, %55, %cst_29 {dimension_numbers = #tpu.dot_dimension_numbers<[1], [0], [0], [1], [0, 0, 1, 1], [], []>} : vector<8x8xf32>, vector<8x8xf32>, vector<8x8xf32> -> vector<8x8xf32>
    %69 = vector.extract_strided_slice %15 {offsets = [16, 0], sizes = [8, 32], strides = [1, 1]} : vector<32x32xf32> to vector<8x32xf32>
    %cst_30 = arith.constant dense<0.000000e+00> : vector<8x32xf32>
    %70 = tpu.matmul %68, %69, %cst_30 {dimension_numbers = #tpu.dot_dimension_numbers<[1], [0], [0], [1], [0, 0, 1, 1], [], []>} : vector<8x8xf32>, vector<8x32xf32>, vector<8x32xf32> -> vector<8x32xf32>
    %71 = arith.addf %52, %70 : vector<8x32xf32>
    %72 = vector.extract_strided_slice %13 {offsets = [0, 24], sizes = [8, 8], strides = [1, 1]} : vector<8x128xf32> to vector<8x8xf32>
    %73 = vector.extract_strided_slice %13 {offsets = [0, 56], sizes = [8, 8], strides = [1, 1]} : vector<8x128xf32> to vector<8x8xf32>
    %74 = vector.extract_strided_slice %13 {offsets = [0, 88], sizes = [8, 8], strides = [1, 1]} : vector<8x128xf32> to vector<8x8xf32>
    %75 = tpu.transpose %73, [1, 0] : vector<8x8xf32> -> vector<8x8xf32>
    %cst_31 = arith.constant dense<0.000000e+00> : vector<8x8xf32>
    %76 = tpu.matmul %72, %75, %cst_31 {dimension_numbers = #tpu.dot_dimension_numbers<[1], [0], [0], [1], [0, 0, 1, 1], [], []>} : vector<8x8xf32>, vector<8x8xf32>, vector<8x8xf32> -> vector<8x8xf32>
    %cst_32 = arith.constant dense<0xFF800000> : vector<8xf32>
    %77 = vector.multi_reduction <maximumf>, %76, %cst_32 [1] : vector<8x8xf32> to vector<8xf32>
    %78 = vector.shape_cast %77 : vector<8xf32> to vector<8x1xf32>
    %79 = vector.broadcast %78 : vector<8x1xf32> to vector<8x8xf32>
    %80 = arith.subf %76, %79 : vector<8x8xf32>
    %81 = math.exp %80 : vector<8x8xf32>
    %cst_33 = arith.constant dense<0.000000e+00> : vector<8xf32>
    %82 = vector.multi_reduction <add>, %81, %cst_33 [1] : vector<8x8xf32> to vector<8xf32>
    %83 = vector.shape_cast %82 : vector<8xf32> to vector<8x1xf32>
    %84 = tpu.reciprocal %83 {approx = true} : vector<8x1xf32> -> vector<8x1xf32>
    %85 = vector.broadcast %84 : vector<8x1xf32> to vector<8x8xf32>
    %86 = arith.mulf %81, %85 : vector<8x8xf32>
    %cst_34 = arith.constant dense<0.000000e+00> : vector<8x8xf32>
    %87 = tpu.matmul %86, %74, %cst_34 {dimension_numbers = #tpu.dot_dimension_numbers<[1], [0], [0], [1], [0, 0, 1, 1], [], []>} : vector<8x8xf32>, vector<8x8xf32>, vector<8x8xf32> -> vector<8x8xf32>
    %88 = vector.extract_strided_slice %15 {offsets = [24, 0], sizes = [8, 32], strides = [1, 1]} : vector<32x32xf32> to vector<8x32xf32>
    %cst_35 = arith.constant dense<0.000000e+00> : vector<8x32xf32>
    %89 = tpu.matmul %87, %88, %cst_35 {dimension_numbers = #tpu.dot_dimension_numbers<[1], [0], [0], [1], [0, 0, 1, 1], [], []>} : vector<8x8xf32>, vector<8x32xf32>, vector<8x32xf32> -> vector<8x32xf32>
    %90 = arith.addf %71, %89 : vector<8x32xf32>
    %c0_36 = arith.constant 0 : index
    %c0_37 = arith.constant 0 : index
    %c0_38 = arith.constant 0 : index
    %91 = vector.load %arg7[%c0_36, %c0_37, %c0_38] : memref<2x1x32xf32, #tpu.memory_space<vmem>>, vector<1x1x32xf32>
    %92 = vector.shape_cast %91 : vector<1x1x32xf32> to vector<1x32xf32>
    %93 = vector.broadcast %92 : vector<1x32xf32> to vector<8x32xf32>
    %94 = arith.addf %90, %93 : vector<8x32xf32>
    %95 = arith.addf %94, %6 : vector<8x32xf32>
    %c0_39 = arith.constant 0 : index
    %c0_40 = arith.constant 0 : index
    %c0_41 = arith.constant 0 : index
    %96 = vector.load %arg12[%c0_39, %c0_40, %c0_41] : memref<2x1x32xf32, #tpu.memory_space<vmem>>, vector<1x1x32xf32>
    %97 = vector.shape_cast %96 : vector<1x1x32xf32> to vector<1x32xf32>
    %c0_42 = arith.constant 0 : index
    %c0_43 = arith.constant 0 : index
    %c0_44 = arith.constant 0 : index
    %98 = vector.load %arg13[%c0_42, %c0_43, %c0_44] : memref<2x1x32xf32, #tpu.memory_space<vmem>>, vector<1x1x32xf32>
    %99 = vector.shape_cast %98 : vector<1x1x32xf32> to vector<1x32xf32>
    %cst_45 = arith.constant dense<0.000000e+00> : vector<8xf32>
    %100 = vector.multi_reduction <add>, %95, %cst_45 [1] : vector<8x32xf32> to vector<8xf32>
    %101 = vector.shape_cast %100 : vector<8xf32> to vector<8x1xf32>
    %cst_46 = arith.constant 3.200000e+01 : f32
    %102 = vector.broadcast %cst_46 : f32 to vector<8x1xf32>
    %103 = arith.divf %101, %102 : vector<8x1xf32>
    %104 = vector.broadcast %103 : vector<8x1xf32> to vector<8x32xf32>
    %105 = arith.subf %95, %104 : vector<8x32xf32>
    %106 = arith.mulf %105, %105 : vector<8x32xf32>
    %cst_47 = arith.constant dense<0.000000e+00> : vector<8xf32>
    %107 = vector.multi_reduction <add>, %106, %cst_47 [1] : vector<8x32xf32> to vector<8xf32>
    %108 = vector.shape_cast %107 : vector<8xf32> to vector<8x1xf32>
    %cst_48 = arith.constant 3.200000e+01 : f32
    %109 = vector.broadcast %cst_48 : f32 to vector<8x1xf32>
    %110 = arith.divf %108, %109 : vector<8x1xf32>
    %111 = vector.broadcast %103 : vector<8x1xf32> to vector<8x32xf32>
    %112 = arith.subf %95, %111 : vector<8x32xf32>
    %cst_49 = arith.constant 9.99999974E-6 : f32
    %113 = vector.broadcast %cst_49 : f32 to vector<8x1xf32>
    %114 = arith.addf %110, %113 : vector<8x1xf32>
    %115 = math.rsqrt %114 : vector<8x1xf32>
    %116 = vector.broadcast %115 : vector<8x1xf32> to vector<8x32xf32>
    %117 = arith.mulf %112, %116 : vector<8x32xf32>
    %118 = vector.broadcast %97 : vector<1x32xf32> to vector<8x32xf32>
    %119 = arith.mulf %117, %118 : vector<8x32xf32>
    %120 = vector.broadcast %99 : vector<1x32xf32> to vector<8x32xf32>
    %121 = arith.addf %119, %120 : vector<8x32xf32>
    %c0_50 = arith.constant 0 : index
    %c0_51 = arith.constant 0 : index
    %c0_52 = arith.constant 0 : index
    %122 = vector.load %arg8[%c0_50, %c0_51, %c0_52] : memref<2x32x128xf32, #tpu.memory_space<vmem>>, vector<1x32x128xf32>
    %123 = vector.shape_cast %122 : vector<1x32x128xf32> to vector<32x128xf32>
    %cst_53 = arith.constant dense<0.000000e+00> : vector<8x128xf32>
    %124 = tpu.matmul %121, %123, %cst_53 {dimension_numbers = #tpu.dot_dimension_numbers<[1], [0], [0], [1], [0, 0, 1, 1], [], []>} : vector<8x32xf32>, vector<32x128xf32>, vector<8x128xf32> -> vector<8x128xf32>
    %c0_54 = arith.constant 0 : index
    %c0_55 = arith.constant 0 : index
    %c0_56 = arith.constant 0 : index
    %125 = vector.load %arg9[%c0_54, %c0_55, %c0_56] : memref<2x1x128xf32, #tpu.memory_space<vmem>>, vector<1x1x128xf32>
    %126 = vector.shape_cast %125 : vector<1x1x128xf32> to vector<1x128xf32>
    %127 = vector.broadcast %126 : vector<1x128xf32> to vector<8x128xf32>
    %128 = arith.addf %124, %127 : vector<8x128xf32>
    %cst_57 = arith.constant 0.000000e+00 : f32
    %129 = vector.broadcast %cst_57 : f32 to vector<8x128xf32>
    %130 = arith.maximumf %128, %129 : vector<8x128xf32>
    %c0_58 = arith.constant 0 : index
    %c0_59 = arith.constant 0 : index
    %c0_60 = arith.constant 0 : index
    %131 = vector.load %arg10[%c0_58, %c0_59, %c0_60] : memref<2x128x32xf32, #tpu.memory_space<vmem>>, vector<1x128x32xf32>
    %132 = vector.shape_cast %131 : vector<1x128x32xf32> to vector<128x32xf32>
    %cst_61 = arith.constant dense<0.000000e+00> : vector<8x32xf32>
    %133 = tpu.matmul %130, %132, %cst_61 {dimension_numbers = #tpu.dot_dimension_numbers<[1], [0], [0], [1], [0, 0, 1, 1], [], []>} : vector<8x128xf32>, vector<128x32xf32>, vector<8x32xf32> -> vector<8x32xf32>
    %c0_62 = arith.constant 0 : index
    %c0_63 = arith.constant 0 : index
    %c0_64 = arith.constant 0 : index
    %134 = vector.load %arg11[%c0_62, %c0_63, %c0_64] : memref<2x1x32xf32, #tpu.memory_space<vmem>>, vector<1x1x32xf32>
    %135 = vector.shape_cast %134 : vector<1x1x32xf32> to vector<1x32xf32>
    %136 = vector.broadcast %135 : vector<1x32xf32> to vector<8x32xf32>
    %137 = arith.addf %133, %136 : vector<8x32xf32>
    %138 = arith.addf %137, %121 : vector<8x32xf32>
    %c0_65 = arith.constant 0 : index
    %c0_66 = arith.constant 0 : index
    %c0_67 = arith.constant 0 : index
    %139 = vector.load %arg14[%c0_65, %c0_66, %c0_67] : memref<2x1x32xf32, #tpu.memory_space<vmem>>, vector<1x1x32xf32>
    %140 = vector.shape_cast %139 : vector<1x1x32xf32> to vector<1x32xf32>
    %c0_68 = arith.constant 0 : index
    %c0_69 = arith.constant 0 : index
    %c0_70 = arith.constant 0 : index
    %141 = vector.load %arg15[%c0_68, %c0_69, %c0_70] : memref<2x1x32xf32, #tpu.memory_space<vmem>>, vector<1x1x32xf32>
    %142 = vector.shape_cast %141 : vector<1x1x32xf32> to vector<1x32xf32>
    %cst_71 = arith.constant dense<0.000000e+00> : vector<8xf32>
    %143 = vector.multi_reduction <add>, %138, %cst_71 [1] : vector<8x32xf32> to vector<8xf32>
    %144 = vector.shape_cast %143 : vector<8xf32> to vector<8x1xf32>
    %cst_72 = arith.constant 3.200000e+01 : f32
    %145 = vector.broadcast %cst_72 : f32 to vector<8x1xf32>
    %146 = arith.divf %144, %145 : vector<8x1xf32>
    %147 = vector.broadcast %146 : vector<8x1xf32> to vector<8x32xf32>
    %148 = arith.subf %138, %147 : vector<8x32xf32>
    %149 = arith.mulf %148, %148 : vector<8x32xf32>
    %cst_73 = arith.constant dense<0.000000e+00> : vector<8xf32>
    %150 = vector.multi_reduction <add>, %149, %cst_73 [1] : vector<8x32xf32> to vector<8xf32>
    %151 = vector.shape_cast %150 : vector<8xf32> to vector<8x1xf32>
    %cst_74 = arith.constant 3.200000e+01 : f32
    %152 = vector.broadcast %cst_74 : f32 to vector<8x1xf32>
    %153 = arith.divf %151, %152 : vector<8x1xf32>
    %154 = vector.broadcast %146 : vector<8x1xf32> to vector<8x32xf32>
    %155 = arith.subf %138, %154 : vector<8x32xf32>
    %cst_75 = arith.constant 9.99999974E-6 : f32
    %156 = vector.broadcast %cst_75 : f32 to vector<8x1xf32>
    %157 = arith.addf %153, %156 : vector<8x1xf32>
    %158 = math.rsqrt %157 : vector<8x1xf32>
    %159 = vector.broadcast %158 : vector<8x1xf32> to vector<8x32xf32>
    %160 = arith.mulf %155, %159 : vector<8x32xf32>
    %161 = vector.broadcast %140 : vector<1x32xf32> to vector<8x32xf32>
    %162 = arith.mulf %160, %161 : vector<8x32xf32>
    %163 = vector.broadcast %142 : vector<1x32xf32> to vector<8x32xf32>
    %164 = arith.addf %162, %163 : vector<8x32xf32>
    %c1 = arith.constant 1 : index
    %c0_76 = arith.constant 0 : index
    %c0_77 = arith.constant 0 : index
    %165 = vector.load %arg4[%c1, %c0_76, %c0_77] : memref<2x32x128xf32, #tpu.memory_space<vmem>>, vector<1x32x128xf32>
    %166 = vector.shape_cast %165 : vector<1x32x128xf32> to vector<32x128xf32>
    %cst_78 = arith.constant dense<0.000000e+00> : vector<8x128xf32>
    %167 = tpu.matmul %164, %166, %cst_78 {dimension_numbers = #tpu.dot_dimension_numbers<[1], [0], [0], [1], [0, 0, 1, 1], [], []>} : vector<8x32xf32>, vector<32x128xf32>, vector<8x128xf32> -> vector<8x128xf32>
    %c1_79 = arith.constant 1 : index
    %c0_80 = arith.constant 0 : index
    %c0_81 = arith.constant 0 : index
    %168 = vector.load %arg5[%c1_79, %c0_80, %c0_81] : memref<2x1x128xf32, #tpu.memory_space<vmem>>, vector<1x1x128xf32>
    %169 = vector.shape_cast %168 : vector<1x1x128xf32> to vector<1x128xf32>
    %170 = vector.broadcast %169 : vector<1x128xf32> to vector<8x128xf32>
    %171 = arith.addf %167, %170 : vector<8x128xf32>
    %c1_82 = arith.constant 1 : index
    %c0_83 = arith.constant 0 : index
    %c0_84 = arith.constant 0 : index
    %172 = vector.load %arg6[%c1_82, %c0_83, %c0_84] : memref<2x32x32xf32, #tpu.memory_space<vmem>>, vector<1x32x32xf32>
    %173 = vector.shape_cast %172 : vector<1x32x32xf32> to vector<32x32xf32>
    %174 = vector.extract_strided_slice %171 {offsets = [0, 0], sizes = [8, 8], strides = [1, 1]} : vector<8x128xf32> to vector<8x8xf32>
    %175 = vector.extract_strided_slice %171 {offsets = [0, 32], sizes = [8, 8], strides = [1, 1]} : vector<8x128xf32> to vector<8x8xf32>
    %176 = vector.extract_strided_slice %171 {offsets = [0, 64], sizes = [8, 8], strides = [1, 1]} : vector<8x128xf32> to vector<8x8xf32>
    %177 = tpu.transpose %175, [1, 0] : vector<8x8xf32> -> vector<8x8xf32>
    %cst_85 = arith.constant dense<0.000000e+00> : vector<8x8xf32>
    %178 = tpu.matmul %174, %177, %cst_85 {dimension_numbers = #tpu.dot_dimension_numbers<[1], [0], [0], [1], [0, 0, 1, 1], [], []>} : vector<8x8xf32>, vector<8x8xf32>, vector<8x8xf32> -> vector<8x8xf32>
    %cst_86 = arith.constant dense<0xFF800000> : vector<8xf32>
    %179 = vector.multi_reduction <maximumf>, %178, %cst_86 [1] : vector<8x8xf32> to vector<8xf32>
    %180 = vector.shape_cast %179 : vector<8xf32> to vector<8x1xf32>
    %181 = vector.broadcast %180 : vector<8x1xf32> to vector<8x8xf32>
    %182 = arith.subf %178, %181 : vector<8x8xf32>
    %183 = math.exp %182 : vector<8x8xf32>
    %cst_87 = arith.constant dense<0.000000e+00> : vector<8xf32>
    %184 = vector.multi_reduction <add>, %183, %cst_87 [1] : vector<8x8xf32> to vector<8xf32>
    %185 = vector.shape_cast %184 : vector<8xf32> to vector<8x1xf32>
    %186 = tpu.reciprocal %185 {approx = true} : vector<8x1xf32> -> vector<8x1xf32>
    %187 = vector.broadcast %186 : vector<8x1xf32> to vector<8x8xf32>
    %188 = arith.mulf %183, %187 : vector<8x8xf32>
    %cst_88 = arith.constant dense<0.000000e+00> : vector<8x8xf32>
    %189 = tpu.matmul %188, %176, %cst_88 {dimension_numbers = #tpu.dot_dimension_numbers<[1], [0], [0], [1], [0, 0, 1, 1], [], []>} : vector<8x8xf32>, vector<8x8xf32>, vector<8x8xf32> -> vector<8x8xf32>
    %190 = vector.extract_strided_slice %173 {offsets = [0, 0], sizes = [8, 32], strides = [1, 1]} : vector<32x32xf32> to vector<8x32xf32>
    %cst_89 = arith.constant dense<0.000000e+00> : vector<8x32xf32>
    %191 = tpu.matmul %189, %190, %cst_89 {dimension_numbers = #tpu.dot_dimension_numbers<[1], [0], [0], [1], [0, 0, 1, 1], [], []>} : vector<8x8xf32>, vector<8x32xf32>, vector<8x32xf32> -> vector<8x32xf32>
    %192 = vector.extract_strided_slice %171 {offsets = [0, 8], sizes = [8, 8], strides = [1, 1]} : vector<8x128xf32> to vector<8x8xf32>
    %193 = vector.extract_strided_slice %171 {offsets = [0, 40], sizes = [8, 8], strides = [1, 1]} : vector<8x128xf32> to vector<8x8xf32>
    %194 = vector.extract_strided_slice %171 {offsets = [0, 72], sizes = [8, 8], strides = [1, 1]} : vector<8x128xf32> to vector<8x8xf32>
    %195 = tpu.transpose %193, [1, 0] : vector<8x8xf32> -> vector<8x8xf32>
    %cst_90 = arith.constant dense<0.000000e+00> : vector<8x8xf32>
    %196 = tpu.matmul %192, %195, %cst_90 {dimension_numbers = #tpu.dot_dimension_numbers<[1], [0], [0], [1], [0, 0, 1, 1], [], []>} : vector<8x8xf32>, vector<8x8xf32>, vector<8x8xf32> -> vector<8x8xf32>
    %cst_91 = arith.constant dense<0xFF800000> : vector<8xf32>
    %197 = vector.multi_reduction <maximumf>, %196, %cst_91 [1] : vector<8x8xf32> to vector<8xf32>
    %198 = vector.shape_cast %197 : vector<8xf32> to vector<8x1xf32>
    %199 = vector.broadcast %198 : vector<8x1xf32> to vector<8x8xf32>
    %200 = arith.subf %196, %199 : vector<8x8xf32>
    %201 = math.exp %200 : vector<8x8xf32>
    %cst_92 = arith.constant dense<0.000000e+00> : vector<8xf32>
    %202 = vector.multi_reduction <add>, %201, %cst_92 [1] : vector<8x8xf32> to vector<8xf32>
    %203 = vector.shape_cast %202 : vector<8xf32> to vector<8x1xf32>
    %204 = tpu.reciprocal %203 {approx = true} : vector<8x1xf32> -> vector<8x1xf32>
    %205 = vector.broadcast %204 : vector<8x1xf32> to vector<8x8xf32>
    %206 = arith.mulf %201, %205 : vector<8x8xf32>
    %cst_93 = arith.constant dense<0.000000e+00> : vector<8x8xf32>
    %207 = tpu.matmul %206, %194, %cst_93 {dimension_numbers = #tpu.dot_dimension_numbers<[1], [0], [0], [1], [0, 0, 1, 1], [], []>} : vector<8x8xf32>, vector<8x8xf32>, vector<8x8xf32> -> vector<8x8xf32>
    %208 = vector.extract_strided_slice %173 {offsets = [8, 0], sizes = [8, 32], strides = [1, 1]} : vector<32x32xf32> to vector<8x32xf32>
    %cst_94 = arith.constant dense<0.000000e+00> : vector<8x32xf32>
    %209 = tpu.matmul %207, %208, %cst_94 {dimension_numbers = #tpu.dot_dimension_numbers<[1], [0], [0], [1], [0, 0, 1, 1], [], []>} : vector<8x8xf32>, vector<8x32xf32>, vector<8x32xf32> -> vector<8x32xf32>
    %210 = arith.addf %191, %209 : vector<8x32xf32>
    %211 = vector.extract_strided_slice %171 {offsets = [0, 16], sizes = [8, 8], strides = [1, 1]} : vector<8x128xf32> to vector<8x8xf32>
    %212 = vector.extract_strided_slice %171 {offsets = [0, 48], sizes = [8, 8], strides = [1, 1]} : vector<8x128xf32> to vector<8x8xf32>
    %213 = vector.extract_strided_slice %171 {offsets = [0, 80], sizes = [8, 8], strides = [1, 1]} : vector<8x128xf32> to vector<8x8xf32>
    %214 = tpu.transpose %212, [1, 0] : vector<8x8xf32> -> vector<8x8xf32>
    %cst_95 = arith.constant dense<0.000000e+00> : vector<8x8xf32>
    %215 = tpu.matmul %211, %214, %cst_95 {dimension_numbers = #tpu.dot_dimension_numbers<[1], [0], [0], [1], [0, 0, 1, 1], [], []>} : vector<8x8xf32>, vector<8x8xf32>, vector<8x8xf32> -> vector<8x8xf32>
    %cst_96 = arith.constant dense<0xFF800000> : vector<8xf32>
    %216 = vector.multi_reduction <maximumf>, %215, %cst_96 [1] : vector<8x8xf32> to vector<8xf32>
    %217 = vector.shape_cast %216 : vector<8xf32> to vector<8x1xf32>
    %218 = vector.broadcast %217 : vector<8x1xf32> to vector<8x8xf32>
    %219 = arith.subf %215, %218 : vector<8x8xf32>
    %220 = math.exp %219 : vector<8x8xf32>
    %cst_97 = arith.constant dense<0.000000e+00> : vector<8xf32>
    %221 = vector.multi_reduction <add>, %220, %cst_97 [1] : vector<8x8xf32> to vector<8xf32>
    %222 = vector.shape_cast %221 : vector<8xf32> to vector<8x1xf32>
    %223 = tpu.reciprocal %222 {approx = true} : vector<8x1xf32> -> vector<8x1xf32>
    %224 = vector.broadcast %223 : vector<8x1xf32> to vector<8x8xf32>
    %225 = arith.mulf %220, %224 : vector<8x8xf32>
    %cst_98 = arith.constant dense<0.000000e+00> : vector<8x8xf32>
    %226 = tpu.matmul %225, %213, %cst_98 {dimension_numbers = #tpu.dot_dimension_numbers<[1], [0], [0], [1], [0, 0, 1, 1], [], []>} : vector<8x8xf32>, vector<8x8xf32>, vector<8x8xf32> -> vector<8x8xf32>
    %227 = vector.extract_strided_slice %173 {offsets = [16, 0], sizes = [8, 32], strides = [1, 1]} : vector<32x32xf32> to vector<8x32xf32>
    %cst_99 = arith.constant dense<0.000000e+00> : vector<8x32xf32>
    %228 = tpu.matmul %226, %227, %cst_99 {dimension_numbers = #tpu.dot_dimension_numbers<[1], [0], [0], [1], [0, 0, 1, 1], [], []>} : vector<8x8xf32>, vector<8x32xf32>, vector<8x32xf32> -> vector<8x32xf32>
    %229 = arith.addf %210, %228 : vector<8x32xf32>
    %230 = vector.extract_strided_slice %171 {offsets = [0, 24], sizes = [8, 8], strides = [1, 1]} : vector<8x128xf32> to vector<8x8xf32>
    %231 = vector.extract_strided_slice %171 {offsets = [0, 56], sizes = [8, 8], strides = [1, 1]} : vector<8x128xf32> to vector<8x8xf32>
    %232 = vector.extract_strided_slice %171 {offsets = [0, 88], sizes = [8, 8], strides = [1, 1]} : vector<8x128xf32> to vector<8x8xf32>
    %233 = tpu.transpose %231, [1, 0] : vector<8x8xf32> -> vector<8x8xf32>
    %cst_100 = arith.constant dense<0.000000e+00> : vector<8x8xf32>
    %234 = tpu.matmul %230, %233, %cst_100 {dimension_numbers = #tpu.dot_dimension_numbers<[1], [0], [0], [1], [0, 0, 1, 1], [], []>} : vector<8x8xf32>, vector<8x8xf32>, vector<8x8xf32> -> vector<8x8xf32>
    %cst_101 = arith.constant dense<0xFF800000> : vector<8xf32>
    %235 = vector.multi_reduction <maximumf>, %234, %cst_101 [1] : vector<8x8xf32> to vector<8xf32>
    %236 = vector.shape_cast %235 : vector<8xf32> to vector<8x1xf32>
    %237 = vector.broadcast %236 : vector<8x1xf32> to vector<8x8xf32>
    %238 = arith.subf %234, %237 : vector<8x8xf32>
    %239 = math.exp %238 : vector<8x8xf32>
    %cst_102 = arith.constant dense<0.000000e+00> : vector<8xf32>
    %240 = vector.multi_reduction <add>, %239, %cst_102 [1] : vector<8x8xf32> to vector<8xf32>
    %241 = vector.shape_cast %240 : vector<8xf32> to vector<8x1xf32>
    %242 = tpu.reciprocal %241 {approx = true} : vector<8x1xf32> -> vector<8x1xf32>
    %243 = vector.broadcast %242 : vector<8x1xf32> to vector<8x8xf32>
    %244 = arith.mulf %239, %243 : vector<8x8xf32>
    %cst_103 = arith.constant dense<0.000000e+00> : vector<8x8xf32>
    %245 = tpu.matmul %244, %232, %cst_103 {dimension_numbers = #tpu.dot_dimension_numbers<[1], [0], [0], [1], [0, 0, 1, 1], [], []>} : vector<8x8xf32>, vector<8x8xf32>, vector<8x8xf32> -> vector<8x8xf32>
    %246 = vector.extract_strided_slice %173 {offsets = [24, 0], sizes = [8, 32], strides = [1, 1]} : vector<32x32xf32> to vector<8x32xf32>
    %cst_104 = arith.constant dense<0.000000e+00> : vector<8x32xf32>
    %247 = tpu.matmul %245, %246, %cst_104 {dimension_numbers = #tpu.dot_dimension_numbers<[1], [0], [0], [1], [0, 0, 1, 1], [], []>} : vector<8x8xf32>, vector<8x32xf32>, vector<8x32xf32> -> vector<8x32xf32>
    %248 = arith.addf %229, %247 : vector<8x32xf32>
    %c1_105 = arith.constant 1 : index
    %c0_106 = arith.constant 0 : index
    %c0_107 = arith.constant 0 : index
    %249 = vector.load %arg7[%c1_105, %c0_106, %c0_107] : memref<2x1x32xf32, #tpu.memory_space<vmem>>, vector<1x1x32xf32>
    %250 = vector.shape_cast %249 : vector<1x1x32xf32> to vector<1x32xf32>
    %251 = vector.broadcast %250 : vector<1x32xf32> to vector<8x32xf32>
    %252 = arith.addf %248, %251 : vector<8x32xf32>
    %253 = arith.addf %252, %164 : vector<8x32xf32>
    %c1_108 = arith.constant 1 : index
    %c0_109 = arith.constant 0 : index
    %c0_110 = arith.constant 0 : index
    %254 = vector.load %arg12[%c1_108, %c0_109, %c0_110] : memref<2x1x32xf32, #tpu.memory_space<vmem>>, vector<1x1x32xf32>
    %255 = vector.shape_cast %254 : vector<1x1x32xf32> to vector<1x32xf32>
    %c1_111 = arith.constant 1 : index
    %c0_112 = arith.constant 0 : index
    %c0_113 = arith.constant 0 : index
    %256 = vector.load %arg13[%c1_111, %c0_112, %c0_113] : memref<2x1x32xf32, #tpu.memory_space<vmem>>, vector<1x1x32xf32>
    %257 = vector.shape_cast %256 : vector<1x1x32xf32> to vector<1x32xf32>
    %cst_114 = arith.constant dense<0.000000e+00> : vector<8xf32>
    %258 = vector.multi_reduction <add>, %253, %cst_114 [1] : vector<8x32xf32> to vector<8xf32>
    %259 = vector.shape_cast %258 : vector<8xf32> to vector<8x1xf32>
    %cst_115 = arith.constant 3.200000e+01 : f32
    %260 = vector.broadcast %cst_115 : f32 to vector<8x1xf32>
    %261 = arith.divf %259, %260 : vector<8x1xf32>
    %262 = vector.broadcast %261 : vector<8x1xf32> to vector<8x32xf32>
    %263 = arith.subf %253, %262 : vector<8x32xf32>
    %264 = arith.mulf %263, %263 : vector<8x32xf32>
    %cst_116 = arith.constant dense<0.000000e+00> : vector<8xf32>
    %265 = vector.multi_reduction <add>, %264, %cst_116 [1] : vector<8x32xf32> to vector<8xf32>
    %266 = vector.shape_cast %265 : vector<8xf32> to vector<8x1xf32>
    %cst_117 = arith.constant 3.200000e+01 : f32
    %267 = vector.broadcast %cst_117 : f32 to vector<8x1xf32>
    %268 = arith.divf %266, %267 : vector<8x1xf32>
    %269 = vector.broadcast %261 : vector<8x1xf32> to vector<8x32xf32>
    %270 = arith.subf %253, %269 : vector<8x32xf32>
    %cst_118 = arith.constant 9.99999974E-6 : f32
    %271 = vector.broadcast %cst_118 : f32 to vector<8x1xf32>
    %272 = arith.addf %268, %271 : vector<8x1xf32>
    %273 = math.rsqrt %272 : vector<8x1xf32>
    %274 = vector.broadcast %273 : vector<8x1xf32> to vector<8x32xf32>
    %275 = arith.mulf %270, %274 : vector<8x32xf32>
    %276 = vector.broadcast %255 : vector<1x32xf32> to vector<8x32xf32>
    %277 = arith.mulf %275, %276 : vector<8x32xf32>
    %278 = vector.broadcast %257 : vector<1x32xf32> to vector<8x32xf32>
    %279 = arith.addf %277, %278 : vector<8x32xf32>
    %c1_119 = arith.constant 1 : index
    %c0_120 = arith.constant 0 : index
    %c0_121 = arith.constant 0 : index
    %280 = vector.load %arg8[%c1_119, %c0_120, %c0_121] : memref<2x32x128xf32, #tpu.memory_space<vmem>>, vector<1x32x128xf32>
    %281 = vector.shape_cast %280 : vector<1x32x128xf32> to vector<32x128xf32>
    %cst_122 = arith.constant dense<0.000000e+00> : vector<8x128xf32>
    %282 = tpu.matmul %279, %281, %cst_122 {dimension_numbers = #tpu.dot_dimension_numbers<[1], [0], [0], [1], [0, 0, 1, 1], [], []>} : vector<8x32xf32>, vector<32x128xf32>, vector<8x128xf32> -> vector<8x128xf32>
    %c1_123 = arith.constant 1 : index
    %c0_124 = arith.constant 0 : index
    %c0_125 = arith.constant 0 : index
    %283 = vector.load %arg9[%c1_123, %c0_124, %c0_125] : memref<2x1x128xf32, #tpu.memory_space<vmem>>, vector<1x1x128xf32>
    %284 = vector.shape_cast %283 : vector<1x1x128xf32> to vector<1x128xf32>
    %285 = vector.broadcast %284 : vector<1x128xf32> to vector<8x128xf32>
    %286 = arith.addf %282, %285 : vector<8x128xf32>
    %cst_126 = arith.constant 0.000000e+00 : f32
    %287 = vector.broadcast %cst_126 : f32 to vector<8x128xf32>
    %288 = arith.maximumf %286, %287 : vector<8x128xf32>
    %c1_127 = arith.constant 1 : index
    %c0_128 = arith.constant 0 : index
    %c0_129 = arith.constant 0 : index
    %289 = vector.load %arg10[%c1_127, %c0_128, %c0_129] : memref<2x128x32xf32, #tpu.memory_space<vmem>>, vector<1x128x32xf32>
    %290 = vector.shape_cast %289 : vector<1x128x32xf32> to vector<128x32xf32>
    %cst_130 = arith.constant dense<0.000000e+00> : vector<8x32xf32>
    %291 = tpu.matmul %288, %290, %cst_130 {dimension_numbers = #tpu.dot_dimension_numbers<[1], [0], [0], [1], [0, 0, 1, 1], [], []>} : vector<8x128xf32>, vector<128x32xf32>, vector<8x32xf32> -> vector<8x32xf32>
    %c1_131 = arith.constant 1 : index
    %c0_132 = arith.constant 0 : index
    %c0_133 = arith.constant 0 : index
    %292 = vector.load %arg11[%c1_131, %c0_132, %c0_133] : memref<2x1x32xf32, #tpu.memory_space<vmem>>, vector<1x1x32xf32>
    %293 = vector.shape_cast %292 : vector<1x1x32xf32> to vector<1x32xf32>
    %294 = vector.broadcast %293 : vector<1x32xf32> to vector<8x32xf32>
    %295 = arith.addf %291, %294 : vector<8x32xf32>
    %296 = arith.addf %295, %279 : vector<8x32xf32>
    %c1_134 = arith.constant 1 : index
    %c0_135 = arith.constant 0 : index
    %c0_136 = arith.constant 0 : index
    %297 = vector.load %arg14[%c1_134, %c0_135, %c0_136] : memref<2x1x32xf32, #tpu.memory_space<vmem>>, vector<1x1x32xf32>
    %298 = vector.shape_cast %297 : vector<1x1x32xf32> to vector<1x32xf32>
    %c1_137 = arith.constant 1 : index
    %c0_138 = arith.constant 0 : index
    %c0_139 = arith.constant 0 : index
    %299 = vector.load %arg15[%c1_137, %c0_138, %c0_139] : memref<2x1x32xf32, #tpu.memory_space<vmem>>, vector<1x1x32xf32>
    %300 = vector.shape_cast %299 : vector<1x1x32xf32> to vector<1x32xf32>
    %cst_140 = arith.constant dense<0.000000e+00> : vector<8xf32>
    %301 = vector.multi_reduction <add>, %296, %cst_140 [1] : vector<8x32xf32> to vector<8xf32>
    %302 = vector.shape_cast %301 : vector<8xf32> to vector<8x1xf32>
    %cst_141 = arith.constant 3.200000e+01 : f32
    %303 = vector.broadcast %cst_141 : f32 to vector<8x1xf32>
    %304 = arith.divf %302, %303 : vector<8x1xf32>
    %305 = vector.broadcast %304 : vector<8x1xf32> to vector<8x32xf32>
    %306 = arith.subf %296, %305 : vector<8x32xf32>
    %307 = arith.mulf %306, %306 : vector<8x32xf32>
    %cst_142 = arith.constant dense<0.000000e+00> : vector<8xf32>
    %308 = vector.multi_reduction <add>, %307, %cst_142 [1] : vector<8x32xf32> to vector<8xf32>
    %309 = vector.shape_cast %308 : vector<8xf32> to vector<8x1xf32>
    %cst_143 = arith.constant 3.200000e+01 : f32
    %310 = vector.broadcast %cst_143 : f32 to vector<8x1xf32>
    %311 = arith.divf %309, %310 : vector<8x1xf32>
    %312 = vector.broadcast %304 : vector<8x1xf32> to vector<8x32xf32>
    %313 = arith.subf %296, %312 : vector<8x32xf32>
    %cst_144 = arith.constant 9.99999974E-6 : f32
    %314 = vector.broadcast %cst_144 : f32 to vector<8x1xf32>
    %315 = arith.addf %311, %314 : vector<8x1xf32>
    %316 = math.rsqrt %315 : vector<8x1xf32>
    %317 = vector.broadcast %316 : vector<8x1xf32> to vector<8x32xf32>
    %318 = arith.mulf %313, %317 : vector<8x32xf32>
    %319 = vector.broadcast %298 : vector<1x32xf32> to vector<8x32xf32>
    %320 = arith.mulf %318, %319 : vector<8x32xf32>
    %321 = vector.broadcast %300 : vector<1x32xf32> to vector<8x32xf32>
    %322 = arith.addf %320, %321 : vector<8x32xf32>
    %c0_145 = arith.constant 0 : index
    %c0_146 = arith.constant 0 : index
    %323 = vector.load %arg16[%c0_145, %c0_146] : memref<32x32xf32, #tpu.memory_space<vmem>>, vector<32x32xf32>
    %cst_147 = arith.constant dense<0.000000e+00> : vector<8x32xf32>
    %324 = tpu.matmul %322, %323, %cst_147 {dimension_numbers = #tpu.dot_dimension_numbers<[1], [0], [0], [1], [0, 0, 1, 1], [], []>} : vector<8x32xf32>, vector<32x32xf32>, vector<8x32xf32> -> vector<8x32xf32>
    %c0_148 = arith.constant 0 : index
    %c0_149 = arith.constant 0 : index
    %325 = vector.load %arg17[%c0_148, %c0_149] : memref<1x32xf32, #tpu.memory_space<vmem>>, vector<1x32xf32>
    %326 = vector.broadcast %325 : vector<1x32xf32> to vector<8x32xf32>
    %327 = arith.addf %324, %326 : vector<8x32xf32>
    %c0_150 = arith.constant 0 : index
    %c0_151 = arith.constant 0 : index
    %c0_152 = arith.constant 0 : index
    %328 = vector.load %arg18[%c0_150, %c0_151, %c0_152] : memref<1x8x32xf32, #tpu.memory_space<vmem>>, vector<1x8x32xf32>
    %329 = vector.shape_cast %328 : vector<1x8x32xf32> to vector<8x32xf32>
    %330 = vector.shape_cast %327 : vector<8x32xf32> to vector<1x8x32xf32>
    tpu.vector_store %arg18[%c0_150, %c0_151, %c0_152], %330 {strides = array<i32>} : memref<1x8x32xf32, #tpu.memory_space<vmem>>, vector<1x8x32xf32>,
    return
  }
  func.func @transform_0(%arg0: i32) -> (i32, i32, i32) {
    %c0_i32 = arith.constant 0 : i32
    %c0_i32_0 = arith.constant 0 : i32
    %c0_i32_1 = arith.constant 0 : i32
    return %arg0, %c0_i32, %c0_i32_0 : i32, i32, i32
  }
  func.func @transform_1(%arg0: i32) -> (i32, i32) {
    %c0_i32 = arith.constant 0 : i32
    %c0_i32_0 = arith.constant 0 : i32
    %c0_i32_1 = arith.constant 0 : i32
    return %c0_i32, %c0_i32_0 : i32, i32
  }
  func.func @transform_2(%arg0: i32) -> (i32, i32) {
    %c0_i32 = arith.constant 0 : i32
    %c0_i32_0 = arith.constant 0 : i32
    %c0_i32_1 = arith.constant 0 : i32
    return %c0_i32, %c0_i32_0 : i32, i32
  }
  func.func @transform_3(%arg0: i32) -> (i32, i32, i32) {
    %c0_i32 = arith.constant 0 : i32
    %c0_i32_0 = arith.constant 0 : i32
    %c0_i32_1 = arith.constant 0 : i32
    %c0_i32_2 = arith.constant 0 : i32
    return %c0_i32, %c0_i32_0, %c0_i32_1 : i32, i32, i32
  }
  func.func @transform_4(%arg0: i32) -> (i32, i32, i32) {
    %c0_i32 = arith.constant 0 : i32
    %c0_i32_0 = arith.constant 0 : i32
    %c0_i32_1 = arith.constant 0 : i32
    %c0_i32_2 = arith.constant 0 : i32
    return %c0_i32, %c0_i32_0, %c0_i32_1 : i32, i32, i32
  }
  func.func @transform_5(%arg0: i32) -> (i32, i32, i32) {
    %c0_i32 = arith.constant 0 : i32
    %c0_i32_0 = arith.constant 0 : i32
    %c0_i32_1 = arith.constant 0 : i32
    %c0_i32_2 = arith.constant 0 : i32
    return %c0_i32, %c0_i32_0, %c0_i32_1 : i32, i32, i32
  }
  func.func @transform_6(%arg0: i32) -> (i32, i32, i32) {
    %c0_i32 = arith.constant 0 : i32
    %c0_i32_0 = arith.constant 0 : i32
    %c0_i32_1 = arith.constant 0 : i32
    %c0_i32_2 = arith.constant 0 : i32
    return %c0_i32, %c0_i32_0, %c0_i32_1 : i32, i32, i32
  }
  func.func @transform_7(%arg0: i32) -> (i32, i32, i32) {
    %c0_i32 = arith.constant 0 : i32
    %c0_i32_0 = arith.constant 0 : i32
    %c0_i32_1 = arith.constant 0 : i32
    %c0_i32_2 = arith.constant 0 : i32
    return %c0_i32, %c0_i32_0, %c0_i32_1 : i32, i32, i32
  }
  func.func @transform_8(%arg0: i32) -> (i32, i32, i32) {
    %c0_i32 = arith.constant 0 : i32
    %c0_i32_0 = arith.constant 0 : i32
    %c0_i32_1 = arith.constant 0 : i32
    %c0_i32_2 = arith.constant 0 : i32
    return %c0_i32, %c0_i32_0, %c0_i32_1 : i32, i32, i32
  }
  func.func @transform_9(%arg0: i32) -> (i32, i32, i32) {
    %c0_i32 = arith.constant 0 : i32
    %c0_i32_0 = arith.constant 0 : i32
    %c0_i32_1 = arith.constant 0 : i32
    %c0_i32_2 = arith.constant 0 : i32
    return %c0_i32, %c0_i32_0, %c0_i32_1 : i32, i32, i32
  }
  func.func @transform_10(%arg0: i32) -> (i32, i32, i32) {
    %c0_i32 = arith.constant 0 : i32
    %c0_i32_0 = arith.constant 0 : i32
    %c0_i32_1 = arith.constant 0 : i32
    %c0_i32_2 = arith.constant 0 : i32
    return %c0_i32, %c0_i32_0, %c0_i32_1 : i32, i32, i32
  }
  func.func @transform_11(%arg0: i32) -> (i32, i32, i32) {
    %c0_i32 = arith.constant 0 : i32
    %c0_i32_0 = arith.constant 0 : i32
    %c0_i32_1 = arith.constant 0 : i32
    %c0_i32_2 = arith.constant 0 : i32
    return %c0_i32, %c0_i32_0, %c0_i32_1 : i32, i32, i32
  }
  func.func @transform_12(%arg0: i32) -> (i32, i32, i32) {
    %c0_i32 = arith.constant 0 : i32
    %c0_i32_0 = arith.constant 0 : i32
    %c0_i32_1 = arith.constant 0 : i32
    %c0_i32_2 = arith.constant 0 : i32
    return %c0_i32, %c0_i32_0, %c0_i32_1 : i32, i32, i32
  }
  func.func @transform_13(%arg0: i32) -> (i32, i32, i32) {
    %c0_i32 = arith.constant 0 : i32
    %c0_i32_0 = arith.constant 0 : i32
    %c0_i32_1 = arith.constant 0 : i32
    %c0_i32_2 = arith.constant 0 : i32
    return %c0_i32, %c0_i32_0, %c0_i32_1 : i32, i32, i32
  }
  func.func @transform_14(%arg0: i32) -> (i32, i32, i32) {
    %c0_i32 = arith.constant 0 : i32
    %c0_i32_0 = arith.constant 0 : i32
    %c0_i32_1 = arith.constant 0 : i32
    %c0_i32_2 = arith.constant 0 : i32
    return %c0_i32, %c0_i32_0, %c0_i32_1 : i32, i32, i32
  }
  func.func @transform_15(%arg0: i32) -> (i32, i32) {
    %c0_i32 = arith.constant 0 : i32
    %c0_i32_0 = arith.constant 0 : i32
    %c0_i32_1 = arith.constant 0 : i32
    return %c0_i32, %c0_i32_0 : i32, i32
  }
  func.func @transform_16(%arg0: i32) -> (i32, i32) {
    %c0_i32 = arith.constant 0 : i32
    %c0_i32_0 = arith.constant 0 : i32
    %c0_i32_1 = arith.constant 0 : i32
    return %c0_i32, %c0_i32_0 : i32, i32
  }
  func.func @transform_17(%arg0: i32) -> (i32, i32, i32) {
    %c0_i32 = arith.constant 0 : i32
    %c0_i32_0 = arith.constant 0 : i32
    %c0_i32_1 = arith.constant 0 : i32
    return %arg0, %c0_i32, %c0_i32_0 : i32, i32, i32
  }
}

</mosaic_0001>

<bundles_post_ra>
// kernel: simple_transformer_forward.1
= control target key start
LH: loop header
LB: loop body
LE: loop exit
PB: predicated region body
PF: predicated region fallthrough
CT: control target
= control target key end

     0   :  { %s5475_s0 = inlined_call_operand.vmem [shape: f32[2,8,768], index: 0, kind: input, shape index: {}]   ;;  %s5476_s1 = inlined_call_operand.vmem [shape: f32[768,32], index: 1, kind: input, shape index: {}]   ;;  %s5477_s2 = inlined_call_operand.vmem [shape: f32[1,32], index: 2, kind: input, shape index: {}]   ;;  %s5478_s3 = inlined_call_operand.vmem [shape: f32[2,32,128], index: 3, kind: input, shape index: {}]   ;;  %s5479_s4 = inlined_call_operand.vmem [shape: f32[2,1,128], index: 4, kind: input, shape index: {}]   ;;  %s5480_s5 = inlined_call_operand.vmem [shape: f32[2,32,32], index: 5, kind: input, shape index: {}]   ;;  %s5481_s6 = inlined_call_operand.vmem [shape: f32[2,1,32], index: 6, kind: input, shape index: {}]   ;;  %s5482_s7 = inlined_call_operand.vmem [shape: f32[2,32,128], index: 7, kind: input, shape index: {}]   ;;  %s5483_s8 = inlined_call_operand.vmem [shape: f32[2,1,128], index: 8, kind: input, shape index: {}]   ;;  %s5484_s9 = inlined_call_operand.vmem [shape: f32[2,128,32], index: 9, kind: input, shape index: {}]   ;;  %s5485_s10 = inlined_call_operand.vmem [shape: f32[2,1,32], index: 10, kind: input, shape index: {}]   ;;  %s5486_s11 = inlined_call_operand.vmem [shape: f32[2,1,32], index: 11, kind: input, shape index: {}]   ;;  %s5487_s12 = inlined_call_operand.vmem [shape: f32[2,1,32], index: 12, kind: input, shape index: {}]   ;;  %s5488_s13 = inlined_call_operand.vmem [shape: f32[2,1,32], index: 13, kind: input, shape index: {}]   ;;  %s5489_s14 = inlined_call_operand.vmem [shape: f32[2,1,32], index: 14, kind: input, shape index: {}]   ;;  %s5490_s15 = inlined_call_operand.vmem [shape: f32[32,32], index: 15, kind: input, shape index: {}]   ;;  %s5491_s16 = inlined_call_operand.vmem [shape: f32[1,32], index: 16, kind: input, shape index: {}]   ;;  %s5492_s17 = inlined_call_operand.hbm [shape: f32[2,8,32], index: 17, kind: output, shape index: {}]  }
   0x1   :  { %5509 = sst [smem:[#allocation11_spill]] %s5475_s0 }
   0x2   :  { %5510 = sst [smem:[#allocation12_spill]] %s5476_s1 }
   0x3   :  { %5511 = sst [smem:[#allocation13_spill]] %s5491_s16 }
   0x4   :  { %5512 = sst [smem:[#allocation14_spill]] %s5492_s17 }
   0x5   :  { %22 = vsyncpa [#allocation3], 0 }
   0x6   :  { %24 = vsyncpa [#allocation3 + $0x1], 0  ;;  %s4608_s24 = smov 0   ;;  %s4610_s25 = smov 0  }
   0x7   :  { %s4612_s26 = smov 0   ;;  %s4614_s27 = smov 0  }
   0x8 LB: > { %5513 = sst [smem:[#allocation5_spill]] %s4489_s24  ;;  %s4629_s28 = sadd.s32 4294967295, %s4501_s27   ;;  %s4501_s27 = sphi %s4614_s27, %s5536_s27   ;;  %s4497_s26 = sphi %s4612_s26, %s5541_s26   ;;  %s4493_s25 = sphi %s4610_s25, %s5540_s25   ;;  %s4489_s24 = sphi %s4608_s24, %s5539_s24  }
   0x9   : > { %5514 = sst [smem:[#allocation6_spill]] %s4497_s26  ;;  %s3613_s29 = sadd.s32 4294967294, %s4501_s27  }
   0xa   : > { %5515 = sst [smem:[#allocation7_spill]] %s4501_s27  ;;  %s4633_s0 = sadd.s32 1, %s4501_s27  }
   0xb   : > { %5516 = sst [smem:[#allocation8_spill]] %s4633_s0  ;;  %s399_s30 = sadd.s32 1, %s4497_s26 }
   0xc   : > { %s396_s18 = ssub.s32 %s4501_s27, %s4633_s0  ;;  %p409_p0 = scmp.ne.s32.totalorder %s4497_s26, %s4493_s25 }
   0xd   : > { %p397_p1 = scmp.eq.s32.totalorder %s396_s18, 0  ;;  %p410_p2 = scmp.eq.s32.totalorder %s4629_s28, 1 }
   0xe   : > { %p415_p3 = scmp.ne.s32.totalorder %s4493_s25, %s4489_s24  ;;  %p416_p4 = scmp.eq.s32.totalorder %s3613_s29, 1 }
   0xf   : > { %s4644_s19 = scalar_select %p397_p1, %s4497_s26, %s399_s30  }
  0x10   : > { %p4646_p5 = por %p410_p2, %p409_p0  ;;  %p4650_p6 = por %p416_p4, %p415_p3 }
  0x11   : > { %5517 = sst [smem:[#allocation9_spill]] %s4644_s19  ;;  %p3616_p7 = scmp.ge.s32.totalorder %s4501_s27, 1 }
  0x12   : > { %s5519_s20 = scalar_select %p4650_p6, 1, 0 }
  0x13   : > { %p490_p8 = scmp.lt.s32.totalorder %s4501_s27, 3 }
  0x14   : > { %5520 = sst [smem:[#allocation10_spill]] %s5519_s20 }
  0x15   : > { %p491_p9 = pnand %p3616_p7, %p490_p8 }
  0x16   : > { %s5521_s23 = sld [smem:[#allocation12_spill]] (!%p491_p9)  ;;  %p542_p10 = scmp.lt.s32.totalorder (!%p491_p9), %s4629_s28, 1  ;;  %vm4504_vm0 = vmmov (!%p491_p9), 0   ;;  %vm877_vm1 = vcmask (!%p491_p9), 261120   ;;  %vm958_vm2 = vcmask (!%p491_p9), 64512  }
  0x17   : > { %494 = sbr.rel (%p491_p9) target bundleno = 8317 (0x207d), region = 88  ;;  %s5522_s21 = sld [smem:[#allocation11_spill]] (!%p491_p9) }
  0x18   : > { %s4507_s17 = smov (!%p491_p9), 96   ;;  %s5508_s18 = smov (!%p491_p9), 88  }
  0x19   : > { %s4509_s29 = smov (!%p491_p9), 120   ;;  %s5505_s0 = smov (!%p491_p9), 80  }
  0x1a   : > { %s5506_s24 = smov (!%p491_p9), 112   ;;  %s5507_s20 = smov (!%p491_p9), 56  }
  0x1b   : > { %s5503_s27 = smov (!%p491_p9), 104   ;;  %s5502_s30 = smov (!%p491_p9), 40  }
  0x1c   : > { %v569_v0 = vld [vmem:[%s5521_s23 + $0x80] sm:$0xff] (!%p491_p9)  ;;  %v570_v1 = vld [vmem:[%s5521_s23 + $0x88] sm:$0xff] (!%p491_p9)  ;;  %v571_v11 = vld [vmem:[%s5521_s23 + $0x90] sm:$0xff] (!%p491_p9)  ;;  %s5524_s16 = smov (!%p491_p9), 56  }
  0x1d   : > { %v553_v2 = vld [vmem:[%s5521_s23] sm:$0xff] (!%p491_p9)  ;;  %v4171_v3 = vpack.c.bf16 (!%p491_p9), %v570_v1, %v569_v0  ;;  %v554_v4 = vld [vmem:[%s5521_s23 + $0x8] sm:$0xff] (!%p491_p9)  ;;  %v572_v13 = vld [vmem:[%s5521_s23 + $0x98] sm:$0xff] (!%p491_p9) }
  0x1e   : > { %v601_v5 = vld [vmem:[%s5521_s23 + $0x180] sm:$0xff]  ;;  %v602_v6 = vld [vmem:[%s5521_s23 + $0x188] sm:$0xff]  ;;  %v4173_v7 = vpack.c.bf16 %v554_v4, %v553_v2  ;;  %v555_v14 = vld [vmem:[%s5521_s23 + $0x10] sm:$0xff]  ;;  %v4175_v16 = vpack.c.bf16 %v572_v13, %v571_v11  ;;  %s4750_s26 = scalar_select %p542_p10, %s4629_s28, 1 }
  0x1f   : > { %v4203_v8 = vpack.c.bf16 %v602_v6, %v601_v5  ;;  %v585_v9 = vld [vmem:[%s5521_s23 + $0x100] sm:$0xff]  ;;  %v586_v10 = vld [vmem:[%s5521_s23 + $0x108] sm:$0xff]  ;;  %4172 = vmatprep.subr.bf16.mxu0 %v4171_v3  ;;  %v556_v15 = vld [vmem:[%s5521_s23 + $0x18] sm:$0xff] }
  0x20   : > { %v4205_v12 = vpack.c.bf16 %v586_v10, %v585_v9  ;;  %4174 = vmatpush3.bf16.msra.mxu0 %v4173_v7  ;;  %v4177_v17 = vpack.c.bf16 %v556_v15, %v555_v14  ;;  %v603_v18 = vld [vmem:[%s5521_s23 + $0x190] sm:$0xff]  ;;  %v604_v19 = vld [vmem:[%s5521_s23 + $0x198] sm:$0xff]  ;;  %v573_v23 = vld [vmem:[%s5521_s23 + $0xa0] sm:$0xff]  ;;  %s4345_s19 = smul.u32 48, %s4750_s26  ;;  %s4506_s26 = smov 64  }
  0x21   : > { %4204 = vmatprep.subr.bf16.mxu1 %v4203_v8  ;;  %v587_v20 = vld [vmem:[%s5521_s23 + $0x110] sm:$0xff]  ;;  %v4207_v21 = vpack.c.bf16 %v604_v19, %v603_v18  ;;  %v588_v22 = vld [vmem:[%s5521_s23 + $0x118] sm:$0xff]  ;;  %v574_v24 = vld [vmem:[%s5521_s23 + $0xa8] sm:$0xff]  ;;  %4176 = vmatprep.subr.bf16.mxu0 %v4175_v16 }
  0x22   : > { %4206 = vmatpush3.bf16.msra.mxu1 %v4205_v12  ;;  %v4209_v25 = vpack.c.bf16 %v588_v22, %v587_v20  ;;  %v4179_v26 = vpack.c.bf16 %v574_v24, %v573_v23  ;;  %v557_v27 = vld [vmem:[%s5521_s23 + $0x20] sm:$0xff]  ;;  %v558_v28 = vld [vmem:[%s5521_s23 + $0x28] sm:$0xff]  ;;  %v575_v35 = vld [vmem:[%s5521_s23 + $0xb0] sm:$0xff]  ;;  %s4807_s22 = scalar_lea.vmem %s5522_s21, %s4345_s19  ;;  %s5504_s19 = smov 48  }
  0x23   : > { %v605_v29 = vld [vmem:[%s5521_s23 + $0x1a0] sm:$0xff]  ;;  %4208 = vmatprep.subr.bf16.mxu1 %v4207_v21  ;;  %v606_v30 = vld [vmem:[%s5521_s23 + $0x1a8] sm:$0xff]  ;;  %v4181_v33 = vpack.c.bf16 %v558_v28, %v557_v27  ;;  %v576_v36 = vld [vmem:[%s5521_s23 + $0xb8] sm:$0xff]  ;;  %s5525_s21 = smov 112  }
  0x24   : > { %v589_v31 = vld [vmem:[%s5521_s23 + $0x120] sm:$0xff]  ;;  %v590_v32 = vld [vmem:[%s5521_s23 + $0x128] sm:$0xff]  ;;  %4178 = vmatpush3.bf16.msra.mxu0 %v4177_v17  ;;  %v4211_v34 = vpack.c.bf16 %v606_v30, %v605_v29  ;;  %v559_v37 = vld [vmem:[%s5521_s23 + $0x30] sm:$0xff]  ;;  %v4183_v39 = vpack.c.bf16 %v576_v36, %v575_v35 }
  0x25   : > { %4180 = vmatprep.subr.bf16.mxu0 %v4179_v26  ;;  %v4213_v38 = vpack.c.bf16 %v590_v32, %v589_v31  ;;  %v560_v40 = vld [vmem:[%s5521_s23 + $0x38] sm:$0xff]  ;;  %v607_v41 = vld [vmem:[%s5521_s23 + $0x1b0] sm:$0xff]  ;;  %v577_v46 = vld [vmem:[%s5521_s23 + $0xc0] sm:$0xff] }
  0x26   : > { %4210 = vmatpush3.bf16.msra.mxu1 %v4209_v25  ;;  %v608_v42 = vld [vmem:[%s5521_s23 + $0x1b8] sm:$0xff]  ;;  %v591_v44 = vld [vmem:[%s5521_s23 + $0x130] sm:$0xff]  ;;  %v578_v47 = vld [vmem:[%s5521_s23 + $0xc8] sm:$0xff]  ;;  %v4185_v48 = vpack.c.bf16 %v560_v40, %v559_v37 }
  0x27   : > { %4212 = vmatprep.subr.bf16.mxu1 %v4211_v34  ;;  %v4215_v43 = vpack.c.bf16 %v608_v42, %v607_v41  ;;  %v592_v45 = vld [vmem:[%s5521_s23 + $0x138] sm:$0xff]  ;;  %v609_v49 = vld [vmem:[%s5521_s23 + $0x1c0] sm:$0xff]  ;;  %v610_v50 = vld [vmem:[%s5521_s23 + $0x1c8] sm:$0xff]  ;;  %v4187_v52 = vpack.c.bf16 %v578_v47, %v577_v46 }
  0x28   : > { %4182 = vmatpush3.bf16.msra.mxu0 %v4181_v33  ;;  %v4217_v51 = vpack.c.bf16 %v592_v45, %v591_v44  ;;  %v561_v53 = vld [vmem:[%s5521_s23 + $0x40] sm:$0xff]  ;;  %v562_v54 = vld [vmem:[%s5521_s23 + $0x48] sm:$0xff]  ;;  %v4219_v56 = vpack.c.bf16 %v610_v50, %v609_v49  ;;  %v579_v58 = vld [vmem:[%s5521_s23 + $0xd0] sm:$0xff] }
  0x29   : > { %4184 = vmatprep.subr.bf16.mxu0 %v4183_v39  ;;  %v593_v55 = vld [vmem:[%s5521_s23 + $0x140] sm:$0xff]  ;;  %v594_v57 = vld [vmem:[%s5521_s23 + $0x148] sm:$0xff]  ;;  %v580_v59 = vld [vmem:[%s5521_s23 + $0xd8] sm:$0xff]  ;;  %v4189_v62 = vpack.c.bf16 %v562_v54, %v561_v53 }
  0x2a   : > { %4214 = vmatpush3.bf16.msra.mxu1 %v4213_v38  ;;  %v611_v60 = vld [vmem:[%s5521_s23 + $0x1d0] sm:$0xff]  ;;  %v612_v61 = vld [vmem:[%s5521_s23 + $0x1d8] sm:$0xff]  ;;  %v4221_v63 = vpack.c.bf16 %v594_v57, %v593_v55  ;;  %v4191_v0 = vpack.c.bf16 %v580_v59, %v579_v58  ;;  %v581_v6 = vld [vmem:[%s5521_s23 + $0xe0] sm:$0xff] }
  0x2b   : > { %4216 = vmatprep.subr.bf16.mxu1 %v4215_v43  ;;  %v563_v1 = vld [vmem:[%s5521_s23 + $0x50] sm:$0xff]  ;;  %v564_v2 = vld [vmem:[%s5521_s23 + $0x58] sm:$0xff]  ;;  %v4223_v4 = vpack.c.bf16 %v612_v61, %v611_v60  ;;  %v582_v7 = vld [vmem:[%s5521_s23 + $0xe8] sm:$0xff] }
  0x2c   : > { %4186 = vmatpush3.bf16.msra.mxu0 %v4185_v48  ;;  %v595_v3 = vld [vmem:[%s5521_s23 + $0x150] sm:$0xff]  ;;  %v596_v5 = vld [vmem:[%s5521_s23 + $0x158] sm:$0xff]  ;;  %v613_v8 = vld [vmem:[%s5521_s23 + $0x1e0] sm:$0xff]  ;;  %v4193_v10 = vpack.c.bf16 %v564_v2, %v563_v1  ;;  %v4195_v14 = vpack.c.bf16 %v582_v7, %v581_v6 }
  0x2d   : > { %4188 = vmatprep.subr.bf16.mxu0 %v4187_v52  ;;  %v614_v9 = vld [vmem:[%s5521_s23 + $0x1e8] sm:$0xff]  ;;  %v565_v11 = vld [vmem:[%s5521_s23 + $0x60] sm:$0xff]  ;;  %v4225_v13 = vpack.c.bf16 %v596_v5, %v595_v3  ;;  %v583_v19 = vld [vmem:[%s5521_s23 + $0xf0] sm:$0xff] }
  0x2e   : > { %4218 = vmatpush3.bf16.msra.mxu1 %v4217_v51  ;;  %v548_v12 = vld [vmem:[%s4807_s22 + $0x8] sm:$0xff]  ;;  %v597_v16 = vld [vmem:[%s5521_s23 + $0x160] sm:$0xff]  ;;  %v4227_v18 = vpack.c.bf16 %v614_v9, %v613_v8  ;;  %v584_v20 = vld [vmem:[%s5521_s23 + $0xf8] sm:$0xff] }
  0x2f   : > { %4220 = vmatprep.subr.bf16.mxu1 %v4219_v56  ;;  %v566_v15 = vld [vmem:[%s5521_s23 + $0x68] sm:$0xff]  ;;  %720 = vmatprep.mubr.f32.mxu0 %v548_v12  ;;  %v550_v21 = vld [vmem:[%s4807_s22 + $0x18] sm:$0xff]  ;;  %v615_v22 = vld [vmem:[%s5521_s23 + $0x1f0] sm:$0xff]  ;;  %v4199_v26 = vpack.c.bf16 %v584_v20, %v583_v19 }
  0x30   : > { %4190 = vmatpush3.bf16.msra.mxu0 %v4189_v62  ;;  %v598_v17 = vld [vmem:[%s5521_s23 + $0x168] sm:$0xff]  ;;  %v616_v23 = vld [vmem:[%s5521_s23 + $0x1f8] sm:$0xff]  ;;  %790 = vmatprep.mubr.f32.mxu1 %v550_v21  ;;  %v4197_v24 = vpack.c.bf16 %v566_v15, %v565_v11  ;;  %v567_v27 = vld [vmem:[%s5521_s23 + $0x70] sm:$0xff] }
  0x31   : > { %4192 = vmatprep.subr.bf16.mxu0 %v4191_v0  ;;  %v4229_v25 = vpack.c.bf16 %v598_v17, %v597_v16  ;;  %v568_v28 = vld [vmem:[%s5521_s23 + $0x78] sm:$0xff]  ;;  %v599_v29 = vld [vmem:[%s5521_s23 + $0x170] sm:$0xff]  ;;  %v4231_v30 = vpack.c.bf16 %v616_v23, %v615_v22  ;;  %v633_v32 = vld [vmem:[%s5521_s23 + $0x280] sm:$0xff] }
  0x32   : > { %4222 = vmatpush3.bf16.msra.mxu1 %v4221_v63  ;;  %v600_v31 = vld [vmem:[%s5521_s23 + $0x178] sm:$0xff]  ;;  %v634_v33 = vld [vmem:[%s5521_s23 + $0x288] sm:$0xff]  ;;  %v4201_v34 = vpack.c.bf16 %v568_v28, %v567_v27  ;;  %v617_v37 = vld [vmem:[%s5521_s23 + $0x200] sm:$0xff] }
  0x33   : > { %4224 = vmatprep.subr.bf16.mxu1 %v4223_v4  ;;  %v4233_v35 = vpack.c.bf16 %v600_v31, %v599_v29  ;;  %v4235_v36 = vpack.c.bf16 %v634_v33, %v633_v32  ;;  %v618_v38 = vld [vmem:[%s5521_s23 + $0x208] sm:$0xff]  ;;  %v635_v39 = vld [vmem:[%s5521_s23 + $0x290] sm:$0xff]  ;;  %v636_v40 = vld [vmem:[%s5521_s23 + $0x298] sm:$0xff]  ;;  %v4505_v29 = vmov 0.0  }
  0x34   : > { %4194 = vmatpush3.bf16.msra.mxu0 %v4193_v10  ;;  %v547_v41 = vld [vmem:[%s4807_s22] sm:$0xff]  ;;  %v4237_v42 = vpack.c.bf16 %v618_v38, %v617_v37  ;;  %v549_v43 = vld [vmem:[%s4807_s22 + $0x10] sm:$0xff]  ;;  %v4239_v44 = vpack.c.bf16 %v636_v40, %v635_v39  ;;  %v620_v46 = vld [vmem:[%s5521_s23 + $0x218] sm:$0xff] }
  0x35   : > { %4196 = vmatprep.subr.bf16.mxu0 %v4195_v14  ;;  %v619_v45 = vld [vmem:[%s5521_s23 + $0x210] sm:$0xff]  ;;  %v637_v47 = vld [vmem:[%s5521_s23 + $0x2a0] sm:$0xff]  ;;  %v638_v48 = vld [vmem:[%s5521_s23 + $0x2a8] sm:$0xff] }
  0x36   : > { %4226 = vmatpush3.bf16.msra.mxu1 %v4225_v13  ;;  %v552_v49 = vld [vmem:[%s4807_s22 + $0x28] sm:$0xff]  ;;  %v4241_v50 = vpack.c.bf16 %v620_v46, %v619_v45  ;;  %v4243_v51 = vpack.c.bf16 %v638_v48, %v637_v47  ;;  %v621_v52 = vld [vmem:[%s5521_s23 + $0x220] sm:$0xff]  ;;  %v639_v54 = vld [vmem:[%s5521_s23 + $0x2b0] sm:$0xff] }
  0x37   : > { %4228 = vmatprep.subr.bf16.mxu1 %v4227_v18  ;;  %v622_v53 = vld [vmem:[%s5521_s23 + $0x228] sm:$0xff]  ;;  %v640_v55 = vld [vmem:[%s5521_s23 + $0x2b8] sm:$0xff]  ;;  %v623_v58 = vld [vmem:[%s5521_s23 + $0x230] sm:$0xff] }
  0x38   : > { %4198 = vmatpush3.bf16.msra.mxu0 %v4197_v24  ;;  %v4245_v56 = vpack.c.bf16 %v622_v53, %v621_v52  ;;  %v4247_v57 = vpack.c.bf16 %v640_v55, %v639_v54  ;;  %v624_v59 = vld [vmem:[%s5521_s23 + $0x238] sm:$0xff]  ;;  %v641_v60 = vld [vmem:[%s5521_s23 + $0x2c0] sm:$0xff]  ;;  %v642_v61 = vld [vmem:[%s5521_s23 + $0x2c8] sm:$0xff]  ;;  %v4503_v24 = vmov 0.0|0.0  }
  0x39   : > { %4200 = vmatprep.subr.bf16.mxu0 %v4199_v26  ;;  %v4249_v62 = vpack.c.bf16 %v624_v59, %v623_v58  ;;  %v4251_v63 = vpack.c.bf16 %v642_v61, %v641_v60  ;;  %v625_v0 = vld [vmem:[%s5521_s23 + $0x240] sm:$0xff]  ;;  %v626_v1 = vld [vmem:[%s5521_s23 + $0x248] sm:$0xff]  ;;  %v643_v2 = vld [vmem:[%s5521_s23 + $0x2d0] sm:$0xff] }
  0x3a   : > { %4230 = vmatpush3.bf16.msra.mxu1 %v4229_v25  ;;  %v644_v3 = vld [vmem:[%s5521_s23 + $0x2d8] sm:$0xff]  ;;  %v4253_v4 = vpack.c.bf16 %v626_v1, %v625_v0  ;;  %v627_v6 = vld [vmem:[%s5521_s23 + $0x250] sm:$0xff]  ;;  %v645_v8 = vld [vmem:[%s5521_s23 + $0x2e0] sm:$0xff] }
  0x3b   : > { %4232 = vmatprep.subr.bf16.mxu1 %v4231_v30  ;;  %v4255_v5 = vpack.c.bf16 %v644_v3, %v643_v2  ;;  %v628_v7 = vld [vmem:[%s5521_s23 + $0x258] sm:$0xff]  ;;  %v646_v9 = vld [vmem:[%s5521_s23 + $0x2e8] sm:$0xff]  ;;  %v629_v12 = vld [vmem:[%s5521_s23 + $0x260] sm:$0xff] }
  0x3c   : > { %4202 = vmatpush3.bf16.msra.mxu0 %v4201_v34  ;;  %v4257_v10 = vpack.c.bf16 %v628_v7, %v627_v6  ;;  %v4259_v11 = vpack.c.bf16 %v646_v9, %v645_v8  ;;  %v630_v13 = vld [vmem:[%s5521_s23 + $0x268] sm:$0xff]  ;;  %v647_v14 = vld [vmem:[%s5521_s23 + $0x2f0] sm:$0xff]  ;;  %v648_v15 = vld [vmem:[%s5521_s23 + $0x2f8] sm:$0xff] }
  0x3d   : > { %4236 = vmatprep.subr.bf16.mxu0 %v4235_v36  ;;  %v4261_v16 = vpack.c.bf16 %v630_v13, %v629_v12  ;;  %v4263_v17 = vpack.c.bf16 %v648_v15, %v647_v14  ;;  %v631_v18 = vld [vmem:[%s5521_s23 + $0x270] sm:$0xff]  ;;  %v632_v19 = vld [vmem:[%s5521_s23 + $0x278] sm:$0xff]  ;;  %v551_v21 = vld [vmem:[%s4807_s22 + $0x20] sm:$0xff]  ;;  %s5501_s22 = smov 72  }
  0x3e   : > { %4234 = vmatpush3.bf16.msra.mxu1 %v4233_v35  ;;  %v4265_v20 = vpack.c.bf16 %v632_v19, %v631_v18  ;;  %v866_v22 = vld [vmem:[%s5478_s3] sm:$0xff]  ;;  %v867_v23 = vld [vmem:[%s5478_s3 + $0x8] sm:$0xff]  ;;  %v868_v26 = vld [vmem:[%s5478_s3 + $0x10] sm:$0xff] }
  0x3f   : > { %721 = vmatmul.mubr.f32.vlgmr.msra.gmra.mrb[0].mxu0 %v547_v41  ;;  %v4268_v25 = vpack.c.bf16 %v867_v23, %v866_v22  ;;  %v869_v27 = vld [vmem:[%s5478_s3 + $0x18] sm:$0xff]  ;;  %3937 = vmatprep.subr.mxu1 %v4505_v29  ;;  %v3619_v31 = vld [vmem:[%s5477_s2] ss:$0 sm:$0xff]  ;;  %v952_v22 = vld [vmem:[%s5480_s5 + $0x8] sm:$0xff] }
  0x40   : > { %4238 = vmatpush3.bf16.msra.mxu0 %v4237_v42  ;;  %860 = vmatprep.mubr.f32.mxu0 %v552_v49  ;;  %v4271_v28 = vpack.c.bf16 %v869_v27, %v868_v26 }
  0x41   : > { %791 = vmatmul.mubr.f32.vlgmr.msra.gmra.mrb[0].mxu1 %v549_v43  ;;  %4240 = vmatprep.subr.bf16.mxu0 %v4239_v44  ;;  %v3620_v43 = vld [vmem:[%s5479_s4] ss:$0 sm:$0xff] }
  0x42   : > { %3939 = vmatprep.mubr.msk.f32.mxu1 %vm4504_vm0, %v4505_v29 }
  0x44   : > { %4242 = vmatpush3.bf16.msra.mxu0 %v4241_v50 }
  0x45   : > { %4244 = vmatprep.subr.bf16.mxu0 %v4243_v51 }
  0x48   : > { %4246 = vmatpush3.bf16.msra.mxu0 %v4245_v56 }
  0x49   : > { %4248 = vmatprep.subr.bf16.mxu0 %v4247_v57 }
  0x4c   : > { %4250 = vmatpush3.bf16.msra.mxu0 %v4249_v62 }
  0x4d   : > { %4252 = vmatprep.subr.bf16.mxu0 %v4251_v63 }
  0x50   : > { %4254 = vmatpush3.bf16.msra.mxu0 %v4253_v4 }
  0x51   : > { %4256 = vmatprep.subr.bf16.mxu0 %v4255_v5 }
  0x54   : > { %4258 = vmatpush3.bf16.msra.mxu0 %v4257_v10 }
  0x55   : > { %4260 = vmatprep.subr.bf16.mxu0 %v4259_v11 }
  0x58   : > { %4262 = vmatpush3.bf16.msra.mxu0 %v4261_v16 }
  0x59   : > { %4264 = vmatprep.subr.bf16.mxu0 %v4263_v17 }
  0x5c   : > { %4266 = vmatpush3.bf16.msra.mxu0 %v4265_v20 }
  0x5d   : > { %4267 = vmatprep.subr.bf16.mxu0 %v4503_v24 }
  0x5f   : > { %861 = vmatmul.mubr.f32.vlgmr.msra.gmra.mrb[2].mxu0 %v551_v21 }
  0x60   : > { %4269 = vmatpush3.bf16.msra.mxu0 %v4268_v25  ;;  %3934 = vmatprep.mubr.msk.f32.mxu0 %vm4504_vm0, %v4505_v29  ;;  %v951_v25 = vld [vmem:[%s5480_s5] sm:$0xff] }
  0x61   : > { %4270 = vmatprep.subr.bf16.mxu0 %v4503_v24 }
  0x64   : > { %4272 = vmatpush3.bf16.msra.mxu0 %v4271_v28 }
  0x65   : > { %3967 = vmatprep.subr.mxu0 %v4505_v29 }
 0x112   : > { %v3746_v30 = vpop.f32.mrb[0].mxu0 }
 0x113   : > { %v3747_v32 = vpop.f32.mrb[1].mxu0 }
 0x114   : > { %v3781_v33 = vpop.f32.mrb[0].mxu1  ;;  %v3748_v34 = vadd.f32 %v3747_v32, %v3746_v30 }
 0x115   : > { %v3782_v35 = vpop.f32.mrb[1].mxu1 }
 0x116   : > { %v3783_v36 = vadd.f32 %v3782_v35, %v3781_v33  ;;  %v723_v37 = vadd.f32 %v3748_v34, %v3619_v31  ;;  %v953_v34 = vld [vmem:[%s5480_s5 + $0x10] sm:$0xff] }
 0x118   : > { %v793_v38 = vadd.f32 %v3783_v36, %v723_v37 }
 0x132   : > { %v3816_v39 = vpop.f32.mrb[2].mxu0 }
 0x133   : > { %v3817_v40 = vpop.f32.mrb[3].mxu0 }
 0x134   : > { %v3818_v41 = vadd.f32 %v3817_v40, %v3816_v39 }
 0x136   : > { %v4985_v42 = vadd.f32 %v3818_v41, %v793_v38 }
 0x138   : > { %3935 = vmatmul.mubr.msk.f32.vlgmr.msra.gmra.mrb[4].mxu0 %vm877_vm1, %v4985_v42 }
 0x139   : > { %3969 = vmatprep.mubr.msk.f32.mxu0 %vm4504_vm0, %v4505_v29 }
 0x20b   : > { %v947_v44 = vpop.f32.mrb[4].mxu0 }
 0x20c   : > { %v4994_v45 = vadd.f32 %v3620_v43, %v947_v44  ;;  %v3936_v46 = vpop.f32.mrb[5].mxu0 }
 0x20e   : > { %1044 = vrot.lane.b32.xlu1 %v4994_v45, %s4506_s26  ;;  %956 = vrot.lane.b32.xlu0 %v4994_v45, %s4507_s17 }
 0x212   : > { %1122 = vrot.lane.b32.xlu1 %v4994_v45, %s5508_s18 }
 0x280   : > { %v957_v47 = vpop.permute.xlu0 %956  ;;  %v1045_v48 = vpop.permute.xlu1 %1044 }
 0x281   : > { %3938 = vmatpush3.xpose.msk.msra.mxu1 %vm958_vm2, %v957_v47 }
 0x282   : > { %3942 = vmatprep.subr.mxu1 %v4505_v29 }
 0x284   : > { %3940 = vmatmul.mubr.msk.f32.vlgmr.msra.gmra.mrb[2].mxu1 %vm958_vm2, %v4994_v45  ;;  %v1123_v57 = vpop.permute.xlu1 %1122 }
 0x285   : > { %3943 = vmatpush3.msra.mxu1 %v1045_v48  ;;  %3944 = vmatprep.mubr.msk.f32.mxu1 %vm4504_vm0, %v4505_v29 }
 0x286   : > { %3947 = vmatprep.subr.mxu1 %v4505_v29 }
 0x357   : > { %v1029_v49 = vpop.f32.mrb[2].mxu1 }
 0x358   : > { %v3941_v50 = vpop.f32.mrb[3].mxu1  ;;  %v1033_v51 = vsel %vm958_vm2, %v1029_v49, -inf }
 0x359   : > { %1034 = vmax.xlane.f32.xlu0 %v1033_v51 }
 0x3e6   : > { %v1035_v52 = vpop.xlane.xlu0 %1034 }
 0x3e7   : > { %v1036_v53 = vsub.f32 %v1029_v49, %v1035_v52 }
 0x3e9   : > { %v1037_v54 = vmul.f32 1.442695, %v1036_v53  ;;  %v954_v53 = vld [vmem:[%s5480_s5 + $0x18] sm:$0xff] }
 0x3eb   : > { %4399 = vpow2.f32 %v1037_v54 }
 0x3f5   : > { %v4400_v55 = vpop.eup %4399 }
 0x3f6   : > { %v1039_v56 = vsel %vm958_vm2, %v4400_v55, 0.0 }
 0x3f7   : > { %1040 = vadd.xlane.f32.xlu1 %v1039_v56 }
 0x408   : > { %1120 = vrot.lane.b32.xlu1 %v4994_v45, %s4509_s29 }
 0x40c   : > { %1433 = vrot.lane.b32.xlu1 %v4994_v45, %s5505_s0 }
 0x410   : > { %1431 = vrot.lane.b32.xlu1 %v4994_v45, %s5506_s24 }
 0x484   : > { %v1041_v58 = vpop.xlane.xlu1 %1040 }
 0x485   : > { %4401 = vrcp.f32 %v1041_v58 }
 0x488   : > { %v1121_v59 = vpop.permute.xlu1 %1120 }
 0x48c   : > { %v1434_v60 = vpop.permute.xlu1 %1433 }
 0x48d   : > { %3968 = vmatpush3.xpose.msk.msra.mxu0 %vm958_vm2, %v1434_v60 }
 0x48e   : > { %3977 = vmatprep.subr.mxu0 %v4505_v29 }
 0x48f   : > { %v4402_v61 = vpop.eup %4401 }
 0x490   : > { %v1043_v62 = vmul.f32 %v4402_v61, %v4400_v55  ;;  %v1432_v63 = vpop.permute.xlu1 %1431 }
 0x491   : > { %3970 = vmatmul.mubr.msk.f32.vlgmr.msra.gmra.mrb[6].mxu0 %vm958_vm2, %v1432_v63 }
 0x492   : > { %3945 = vmatmul.mubr.msk.f32.vlgmr.msra.gmra.mrb[4].mxu1 %vm958_vm2, %v1043_v62  ;;  %3979 = vmatprep.mubr.msk.f32.mxu0 %vm4504_vm0, %v4505_v29  ;;  %v3638_v62 = vld [vmem:[%s5481_s6] ss:$0 sm:$0xff] }
 0x493   : > { %3948 = vmatpush3.xpose.msk.msra.mxu1 %vm958_vm2, %v1123_v57  ;;  %3949 = vmatprep.mubr.msk.f32.mxu1 %vm4504_vm0, %v4505_v29 }
 0x494   : > { %3952 = vmatprep.subr.mxu1 %v4505_v29  ;;  %3978 = vmatpush3.msra.mxu0 %v953_v34  ;;  %v2045_v34 = vld [vmem:[%s5484_s9 + $0x60] sm:$0xff] }
 0x495   : > { %3987 = vmatprep.subr.mxu0 %v4505_v29 }
 0x496   : > { %3950 = vmatmul.mubr.msk.f32.vlgmr.msra.gmra.mrb[6].mxu1 %vm958_vm2, %v1121_v59 }
 0x497   : > { %3954 = vmatprep.mubr.msk.f32.mxu1 %vm4504_vm0, %v4505_v29 }
 0x564   : > { %v1505_v0 = vpop.f32.mrb[6].mxu0 }
 0x565   : > { %v1116_v1 = vpop.f32.mrb[4].mxu1  ;;  %v3971_v2 = vpop.f32.mrb[7].mxu0  ;;  %v1509_v7 = vsel %vm958_vm2, %v1505_v0, -inf }
 0x566   : > { %v3946_v3 = vpop.f32.mrb[5].mxu1 }
 0x569   : > { %v1194_v4 = vpop.f32.mrb[6].mxu1 }
 0x56a   : > { %v3951_v5 = vpop.f32.mrb[7].mxu1  ;;  %v1198_v6 = vsel %vm958_vm2, %v1194_v4, -inf }
 0x56b   : > { %1199 = vmax.xlane.f32.xlu0 %v1198_v6 }
 0x581   : > { %1209 = vrot.lane.b32.xlu0 %v4994_v45, %s5507_s20 }
 0x5a0   : > { %1510 = vmax.xlane.f32.xlu0 %v1509_v7 }
 0x5b6   : > { %1672 = vrot.lane.b32.xlu0 %v4994_v45, %s5501_s22  ;;  %s5529_s22 = smov 72  }
 0x5f8   : > { %v1200_v8 = vpop.xlane.xlu0 %1199 }
 0x5f9   : > { %v1201_v9 = vsub.f32 %v1194_v4, %v1200_v8 }
 0x5fb   : > { %v1202_v10 = vmul.f32 1.442695, %v1201_v9  ;;  %v1948_v9 = vld [vmem:[%s5482_s7] sm:$0xff] }
 0x5fc   : > { %v1210_v11 = vpop.permute.xlu0 %1209 }
 0x5fd   : > { %4403 = vpow2.f32 %v1202_v10  ;;  %3953 = vmatpush3.msra.mxu1 %v1210_v11  ;;  %v1949_v10 = vld [vmem:[%s5482_s7 + $0x8] sm:$0xff] }
 0x5fe   : > { %3957 = vmatprep.subr.mxu1 %v4505_v29  ;;  %v4274_v11 = vpack.c.bf16 %v1949_v10, %v1948_v9 }
 0x607   : > { %v4404_v12 = vpop.eup %4403 }
 0x608   : > { %v1204_v13 = vsel %vm958_vm2, %v4404_v12, 0.0 }
 0x609   : > { %1205 = vadd.xlane.f32.xlu1 %v1204_v13 }
 0x62d   : > { %v1511_v14 = vpop.xlane.xlu0 %1510 }
 0x62e   : > { %v1512_v15 = vsub.f32 %v1505_v0, %v1511_v14  ;;  %v2033_v14 = vld [vmem:[%s5484_s9] sm:$0xff] }
 0x630   : > { %v1513_v16 = vmul.f32 1.442695, %v1512_v15  ;;  %v2034_v15 = vld [vmem:[%s5484_s9 + $0x8] sm:$0xff] }
 0x631   : > { %v1673_v32 = vpop.permute.xlu0 %1672 }
 0x632   : > { %4405 = vpow2.f32 %v1513_v16  ;;  %v2035_v16 = vld [vmem:[%s5484_s9 + $0x10] sm:$0xff] }
 0x63c   : > { %v4406_v17 = vpop.eup %4405 }
 0x63d   : > { %v1515_v18 = vsel %vm958_vm2, %v4406_v17, 0.0 }
 0x63e   : > { %1516 = vadd.xlane.f32.xlu1 %v1515_v18  ;;  %v2036_v18 = vld [vmem:[%s5484_s9 + $0x18] sm:$0xff] }
 0x64f   : > { %1520 = vrot.lane.b32.xlu1 %v4994_v45, %s5504_s19  ;;  %s5526_s19 = smov 80  }
 0x653   : > { %1670 = vrot.lane.b32.xlu1 %v4994_v45, %s5503_s27  ;;  %s5527_s27 = smov 48  }
 0x696   : > { %v1206_v19 = vpop.xlane.xlu1 %1205 }
 0x697   : > { %4407 = vrcp.f32 %v1206_v19  ;;  %v4283_v19 = vpack.c.bf16 %v2036_v18, %v2035_v16  ;;  %v3651_v16 = vld [vmem:[%s5479_s4 + $0x1] ss:$0 sm:$0xff] }
 0x6a1   : > { %v4408_v20 = vpop.eup %4407 }
 0x6a2   : > { %v1208_v21 = vmul.f32 %v4408_v20, %v4404_v12  ;;  %v1951_v12 = vld [vmem:[%s5482_s7 + $0x18] sm:$0xff]  ;;  %v2037_v20 = vld [vmem:[%s5484_s9 + $0x20] sm:$0xff] }
 0x6a4   : > { %3955 = vmatmul.mubr.msk.f32.vlgmr.msra.gmra.mrb[8].mxu1 %vm958_vm2, %v1208_v21  ;;  %v2038_v21 = vld [vmem:[%s5484_s9 + $0x28] sm:$0xff] }
 0x6a5   : > { %3958 = vmatpush3.msra.mxu1 %v952_v22  ;;  %3959 = vmatprep.mubr.msk.f32.mxu1 %vm4504_vm0, %v4505_v29  ;;  %v4286_v22 = vpack.c.bf16 %v2038_v21, %v2037_v20 }
 0x6a6   : > { %3962 = vmatprep.subr.mxu1 %v4505_v29 }
 0x6cb   : > { %v1517_v23 = vpop.xlane.xlu1 %1516 }
 0x6cc   : > { %4409 = vrcp.f32 %v1517_v23  ;;  %v2039_v23 = vld [vmem:[%s5484_s9 + $0x30] sm:$0xff] }
 0x6cf   : > { %v1521_v30 = vpop.permute.xlu1 %1520 }
 0x6d3   : > { %v1671_v33 = vpop.permute.xlu1 %1670 }
 0x6d6   : > { %v4410_v28 = vpop.eup %4409 }
 0x6d7   : > { %v1519_v31 = vmul.f32 %v4410_v28, %v4406_v17  ;;  %v4280_v17 = vpack.c.bf16 %v2034_v15, %v2033_v14  ;;  %v2042_v28 = vld [vmem:[%s5484_s9 + $0x48] sm:$0xff] }
 0x777   : > { %v1281_v26 = vpop.f32.mrb[8].mxu1 }
 0x778   : > { %v3956_v27 = vpop.f32.mrb[9].mxu1  ;;  %3960 = vmatmul.mubr.msk.f32.vlgmr.msra.gmra.mrb[10].mxu1 %vm958_vm2, %v1281_v26 }
 0x779   : > { %3963 = vmatpush3.msra.mxu1 %v951_v25  ;;  %3964 = vmatprep.mubr.msk.f32.mxu1 %vm4504_vm0, %v4505_v29  ;;  %v2040_v25 = vld [vmem:[%s5484_s9 + $0x38] sm:$0xff]  ;;  %v2041_v27 = vld [vmem:[%s5484_s9 + $0x40] sm:$0xff] }
 0x77a   : > { %3972 = vmatprep.subr.mxu1 %v4505_v29  ;;  %v4289_v26 = vpack.c.bf16 %v2040_v25, %v2039_v23 }
 0x77c   : > { %3965 = vmatmul.mubr.msk.f32.vlgmr.msra.gmra.mrb[12].mxu1 %vm958_vm2, %v1116_v1 }
 0x77d   : > { %3973 = vmatpush3.msra.mxu1 %v1521_v30  ;;  %3974 = vmatprep.mubr.msk.f32.mxu1 %vm4504_vm0, %v4505_v29  ;;  %v4292_v30 = vpack.c.bf16 %v2042_v28, %v2041_v27 }
 0x77e   : > { %3982 = vmatprep.subr.mxu1 %v4505_v29 }
 0x780   : > { %3975 = vmatmul.mubr.msk.f32.vlgmr.msra.gmra.mrb[14].mxu1 %vm958_vm2, %v1519_v31  ;;  %v2043_v31 = vld [vmem:[%s5484_s9 + $0x50] sm:$0xff] }
 0x781   : > { %3984 = vmatprep.mubr.msk.f32.mxu1 %vm4504_vm0, %v4505_v29 }
 0x784   : > { %3983 = vmatpush3.xpose.msk.msra.mxu1 %vm958_vm2, %v1673_v32  ;;  %v2044_v32 = vld [vmem:[%s5484_s9 + $0x58] sm:$0xff] }
 0x785   : > { %3992 = vmatprep.subr.mxu1 %v4505_v29 }
 0x787   : > { %3985 = vmatmul.mubr.msk.f32.vlgmr.msra.gmra.mrb[16].mxu1 %vm958_vm2, %v1671_v33  ;;  %v4295_v33 = vpack.c.bf16 %v2044_v32, %v2043_v31 }
 0x788   : > { %3994 = vmatprep.mubr.msk.f32.mxu1 %vm4504_vm0, %v4505_v29  ;;  %3993 = vmatpush3.msra.mxu1 %v954_v53 }
 0x789   : > { %4279 = vmatprep.subr.bf16.mxu1 %v4503_v24 }
 0x84b   : > { %v1354_v35 = vpop.f32.mrb[10].mxu1 }
 0x84c   : > { %v3961_v36 = vpop.f32.mrb[11].mxu1 }
 0x84f   : > { %v1427_v37 = vpop.f32.mrb[12].mxu1 }
 0x850   : > { %v1428_v38 = vadd.f32 %v1427_v37, %v1354_v35  ;;  %v3966_v39 = vpop.f32.mrb[13].mxu1  ;;  %v2046_v35 = vld [vmem:[%s5484_s9 + $0x68] sm:$0xff] }
 0x851   : > { %v4298_v36 = vpack.c.bf16 %v2046_v35, %v2045_v34 }
 0x853   : > { %v1592_v40 = vpop.f32.mrb[14].mxu1 }
 0x854   : > { %v3976_v41 = vpop.f32.mrb[15].mxu1  ;;  %3980 = vmatmul.mubr.msk.f32.vlgmr.msra.gmra.mrb[8].mxu0 %vm958_vm2, %v1592_v40 }
 0x855   : > { %3989 = vmatprep.mubr.msk.f32.mxu0 %vm4504_vm0, %v4505_v29  ;;  %v3639_v41 = vld [vmem:[%s5486_s11] ss:$0 sm:$0xff] }
 0x85a   : > { %v1744_v43 = vpop.f32.mrb[16].mxu1 }
 0x85b   : > { %v3986_v44 = vpop.f32.mrb[17].mxu1  ;;  %v1748_v46 = vsel %vm958_vm2, %v1744_v43, -inf }
 0x85c   : > { %1749 = vmax.xlane.f32.xlu1 %v1748_v46  ;;  %v3640_v44 = vld [vmem:[%s5487_s12] ss:$0 sm:$0xff] }
 0x86d   : > { %1759 = vrot.lane.b32.xlu1 %v4994_v45, %s5502_s30  ;;  %s5528_s30 = smov 104  }
 0x8e9   : > { %v1750_v47 = vpop.xlane.xlu1 %1749 }
 0x8ea   : > { %v1751_v48 = vsub.f32 %v1744_v43, %v1750_v47 }
 0x8ec   : > { %v1752_v49 = vmul.f32 1.442695, %v1751_v48  ;;  %v2047_v48 = vld [vmem:[%s5484_s9 + $0x70] sm:$0xff] }
 0x8ed   : > { %v1760_v50 = vpop.permute.xlu1 %1759 }
 0x8ee   : > { %4411 = vpow2.f32 %v1752_v49  ;;  %3988 = vmatpush3.msra.mxu0 %v1760_v50  ;;  %v2048_v49 = vld [vmem:[%s5484_s9 + $0x78] sm:$0xff] }
 0x8ef   : > { %4273 = vmatprep.subr.bf16.mxu0 %v4503_v24  ;;  %v4301_v50 = vpack.c.bf16 %v2048_v49, %v2047_v48 }
 0x8f8   : > { %v4412_v51 = vpop.eup %4411 }
 0x8f9   : > { %v1754_v52 = vsel %vm958_vm2, %v4412_v51, 0.0 }
 0x8fa   : > { %1755 = vadd.xlane.f32.xlu0 %v1754_v52 }
 0x927   : > { %v1665_v45 = vpop.f32.mrb[8].mxu0 }
 0x928   : > { %v1669_v54 = vadd.f32 %v1665_v45, %v1428_v38  ;;  %v3981_v55 = vpop.f32.mrb[9].mxu0 }
 0x929   : > { %v3643_v55 = vld [vmem:[%s5485_s10] ss:$0 sm:$0xff] }
 0x987   : > { %v1756_v56 = vpop.xlane.xlu0 %1755 }
 0x988   : > { %4413 = vrcp.f32 %v1756_v56 }
 0x992   : > { %v4414_v57 = vpop.eup %4413 }
 0x993   : > { %v1758_v58 = vmul.f32 %v4414_v57, %v4412_v51  ;;  %v3641_v51 = vld [vmem:[%s5483_s8] ss:$0 sm:$0xff] }
 0x995   : > { %3990 = vmatmul.mubr.msk.f32.vlgmr.msra.gmra.mrb[10].mxu0 %vm958_vm2, %v1758_v58 }
 0x996   : > { %4005 = vmatprep.mubr.msk.f32.mxu0 %vm4504_vm0, %v4505_v29  ;;  %4275 = vmatpush3.bf16.msra.mxu0 %v4274_v11 }
 0x997   : > { %4276 = vmatprep.subr.bf16.mxu0 %v4503_v24 }
 0xa68   : > { %v1831_v59 = vpop.f32.mrb[10].mxu0 }
 0xa69   : > { %v3991_v60 = vpop.f32.mrb[11].mxu0  ;;  %3995 = vmatmul.mubr.msk.f32.vlgmr.msra.gmra.mrb[18].mxu1 %vm958_vm2, %v1831_v59 }
 0xa6a   : > { %4040 = vmatprep.mubr.msk.f32.mxu1 %vm4504_vm0, %v4505_v29  ;;  %4281 = vmatpush3.bf16.msra.mxu1 %v4280_v17 }
 0xa6b   : > { %4282 = vmatprep.subr.bf16.mxu1 %v4503_v24 }
 0xa6e   : > { %4284 = vmatpush3.bf16.msra.mxu1 %v4283_v19 }
 0xa6f   : > { %4285 = vmatprep.subr.bf16.mxu1 %v4503_v24 }
 0xa72   : > { %4287 = vmatpush3.bf16.msra.mxu1 %v4286_v22 }
 0xa73   : > { %4288 = vmatprep.subr.bf16.mxu1 %v4503_v24 }
 0xa76   : > { %4290 = vmatpush3.bf16.msra.mxu1 %v4289_v26 }
 0xa77   : > { %4291 = vmatprep.subr.bf16.mxu1 %v4503_v24 }
 0xa7a   : > { %4293 = vmatpush3.bf16.msra.mxu1 %v4292_v30 }
 0xa7b   : > { %4294 = vmatprep.subr.bf16.mxu1 %v4503_v24 }
 0xa7e   : > { %4296 = vmatpush3.bf16.msra.mxu1 %v4295_v33 }
 0xa7f   : > { %4297 = vmatprep.subr.bf16.mxu1 %v4503_v24 }
 0xa82   : > { %4299 = vmatpush3.bf16.msra.mxu1 %v4298_v36 }
 0xa83   : > { %4300 = vmatprep.subr.bf16.mxu1 %v4503_v24 }
 0xa86   : > { %4302 = vmatpush3.bf16.msra.mxu1 %v4301_v50 }
 0xa87   : > { %4079 = vmatprep.subr.mxu1 %v4505_v29 }
 0xb3c   : > { %v1904_v61 = vpop.f32.mrb[18].mxu1 }
 0xb3d   : > { %v1908_v63 = vadd.f32 %v1904_v61, %v1669_v54  ;;  %v3996_v0 = vpop.f32.mrb[19].mxu1 }
 0xb3f   : > { %v1916_v1 = vadd.f32 %v3638_v62, %v1908_v63 }
 0xb41   : > { %v1917_v2 = vadd.f32 %v1916_v1, %v4985_v42  ;;  %v1950_v42 = vld [vmem:[%s5482_s7 + $0x10] sm:$0xff] }
 0xb42   : > { %v4277_v13 = vpack.c.bf16 %v1951_v12, %v1950_v42  ;;  %v3644_v42 = vld [vmem:[%s5488_s13] ss:$0 sm:$0xff] }
 0xb43   : > { %v1920_v3 = vsel %vm877_vm1, %v1917_v2, 0.0 }
 0xb44   : > { %1921 = vadd.xlane.f32.xlu0 %v1920_v3  ;;  %4278 = vmatpush3.bf16.msra.mxu0 %v4277_v13  ;;  %v3647_v3 = vld [vmem:[%s5478_s3 + $0x28] sm:$0xff]  ;;  %v3645_v13 = vld [vmem:[%s5489_s14] ss:$0 sm:$0xff] }
 0xb45   : > { %4303 = vmatprep.subr.bf16.mxu0 %v4503_v24 }
 0xbd1   : > { %v1922_v4 = vpop.xlane.xlu0 %1921 }
 0xbd2   : > { %v1924_v5 = vmul.f32 0.03125, %v1922_v4 }
 0xbd4   : > { %v1925_v6 = vsub.f32 %v1917_v2, %v1924_v5  ;;  %v3646_v2 = vld [vmem:[%s5478_s3 + $0x20] sm:$0xff]  ;;  %v3648_v5 = vld [vmem:[%s5478_s3 + $0x30] sm:$0xff] }
 0xbd5   : > { %v4304_v4 = vpack.c.bf16 %v3647_v3, %v3646_v2 }
 0xbd6   : > { %v1926_v7 = vmul.f32 %v1925_v6, %v1925_v6 }
 0xbd8   : > { %v1927_v8 = vsel %vm877_vm1, %v1926_v7, 0.0 }
 0xbd9   : > { %1928 = vadd.xlane.f32.xlu0 %v1927_v8 }
 0xc66   : > { %v1929_v37 = vpop.xlane.xlu0 %1928 }
 0xc67   : > { %v1930_v38 = vmul.f32 0.03125, %v1929_v37  ;;  %v3653_v37 = vld [vmem:[%s5480_s5 + $0x20] sm:$0xff] }
 0xc69   : > { %v1931_v39 = vadd.f32 1e-05, %v1930_v38 }
 0xc6b   : > { %4415 = vrsqrt.f32 %v1931_v39 }
 0xc75   : > { %v4416_v40 = vpop.eup %4415 }
 0xc76   : > { %v1933_v43 = vmul.f32 %v4416_v40, %v1925_v6  ;;  %v3649_v6 = vld [vmem:[%s5478_s3 + $0x38] sm:$0xff] }
 0xc77   : > { %v4307_v7 = vpack.c.bf16 %v3649_v6, %v3648_v5 }
 0xc78   : > { %v1940_v46 = vmul.f32 %v3639_v41, %v1933_v43 }
 0xc7a   : > { %v1947_v47 = vadd.f32 %v3640_v44, %v1940_v46 }
 0xc7c   : > { %4006 = vmatmul.mubr.msk.f32.vlgmr.msra.gmra.mrb[12].mxu0 %vm877_vm1, %v1947_v47 }
 0xc7d   : > { %4051 = vmatprep.mubr.msk.f32.mxu0 %vm4504_vm0, %v4505_v29  ;;  %4305 = vmatpush3.bf16.msra.mxu0 %v4304_v4 }
 0xc7e   : > { %4306 = vmatprep.subr.bf16.mxu0 %v4503_v24 }
 0xc81   : > { %4308 = vmatpush3.bf16.msra.mxu0 %v4307_v7 }
 0xc82   : > { %4054 = vmatprep.subr.mxu0 %v4505_v29 }
 0xd4f   : > { %v2028_v52 = vpop.f32.mrb[12].mxu0 }
 0xd50   : > { %v2029_v53 = vadd.f32 %v3641_v51, %v2028_v52  ;;  %v4007_v45 = vpop.f32.mrb[13].mxu0 }
 0xd52   : > { %v2032_v54 = vmax.f32 %v2029_v53, 0.0 }
 0xd54   : > { %4041 = vmatmul.mubr.f32.vlgmr.msra.gmra.mrb[20].mxu1 %v2032_v54 }
 0xd55   : > { %4081 = vmatprep.mubr.msk.f32.mxu1 %vm4504_vm0, %v4505_v29  ;;  %4080 = vmatpush3.msra.mxu1 %v3653_v37  ;;  %v3674_v37 = vld [vmem:[%s5481_s6 + $0x1] ss:$0 sm:$0xff] }
 0xd56   : > { %4089 = vmatprep.subr.mxu1 %v4505_v29 }
 0xe27   : > { %v2122_v56 = vpop.f32.mrb[20].mxu1 }
 0xe28   : > { %v2123_v57 = vadd.f32 %v3643_v55, %v2122_v56  ;;  %v4042_v58 = vpop.f32.mrb[21].mxu1  ;;  %v3654_v55 = vld [vmem:[%s5480_s5 + $0x28] sm:$0xff] }
 0xe2a   : > { %v2126_v59 = vadd.f32 %v2123_v57, %v1947_v47 }
 0xe2c   : > { %v2129_v60 = vsel %vm877_vm1, %v2126_v59, 0.0 }
 0xe2d   : > { %2130 = vadd.xlane.f32.xlu1 %v2129_v60 }
 0xeba   : > { %v2131_v61 = vpop.xlane.xlu1 %2130 }
 0xebb   : > { %v2132_v62 = vmul.f32 0.03125, %v2131_v61 }
 0xebd   : > { %v2133_v63 = vsub.f32 %v2126_v59, %v2132_v62 }
 0xebf   : > { %v2134_v0 = vmul.f32 %v2133_v63, %v2133_v63 }
 0xec1   : > { %v2135_v1 = vsel %vm877_vm1, %v2134_v0, 0.0 }
 0xec2   : > { %2136 = vadd.xlane.f32.xlu0 %v2135_v1 }
 0xf4f   : > { %v2137_v8 = vpop.xlane.xlu0 %2136 }
 0xf50   : > { %v2138_v9 = vmul.f32 0.03125, %v2137_v8 }
 0xf52   : > { %v2139_v10 = vadd.f32 1e-05, %v2138_v9 }
 0xf54   : > { %4417 = vrsqrt.f32 %v2139_v10 }
 0xf5e   : > { %v4418_v11 = vpop.eup %4417 }
 0xf5f   : > { %v2141_v12 = vmul.f32 %v4418_v11, %v2133_v63 }
 0xf61   : > { %v2148_v14 = vmul.f32 %v3644_v42, %v2141_v12  ;;  %v3655_v12 = vld [vmem:[%s5480_s5 + $0x30] sm:$0xff] }
 0xf63   : > { %v5206_v15 = vadd.f32 %v3645_v13, %v2148_v14 }
 0xf65   : > { %4052 = vmatmul.mubr.msk.f32.vlgmr.msra.gmra.mrb[14].mxu0 %vm877_vm1, %v5206_v15 }
 0xf66   : > { %4056 = vmatprep.mubr.msk.f32.mxu0 %vm4504_vm0, %v4505_v29 }
0x1038   : > { %v2238_v17 = vpop.f32.mrb[14].mxu0 }
0x1039   : > { %v5215_v18 = vadd.f32 %v3651_v16, %v2238_v17  ;;  %v4053_v19 = vpop.f32.mrb[15].mxu0 }
0x103b   : > { %2335 = vrot.lane.b32.xlu1 %v5215_v18, %s4506_s26  ;;  %2248 = vrot.lane.b32.xlu0 %v5215_v18, %s4507_s17  ;;  %s5523_s26 = smov 88  }
0x10ad   : > { %v2249_v20 = vpop.permute.xlu0 %2248  ;;  %v2336_v21 = vpop.permute.xlu1 %2335 }
0x10ae   : > { %4055 = vmatpush3.xpose.msk.msra.mxu0 %vm958_vm2, %v2249_v20 }
0x10af   : > { %4059 = vmatprep.subr.mxu0 %v4505_v29 }
0x10b1   : > { %4057 = vmatmul.mubr.msk.f32.vlgmr.msra.gmra.mrb[16].mxu0 %vm958_vm2, %v5215_v18 }
0x10b2   : > { %4060 = vmatpush3.msra.mxu0 %v2336_v21  ;;  %4061 = vmatprep.mubr.msk.f32.mxu0 %vm4504_vm0, %v4505_v29 }
0x10b3   : > { %4064 = vmatprep.subr.mxu0 %v4505_v29 }
0x1184   : > { %v2320_v22 = vpop.f32.mrb[16].mxu0 }
0x1185   : > { %v4058_v23 = vpop.f32.mrb[17].mxu0  ;;  %v2324_v25 = vsel %vm958_vm2, %v2320_v22, -inf }
0x1186   : > { %2325 = vmax.xlane.f32.xlu0 %v2324_v25 }
0x119c   : > { %2411 = vrot.lane.b32.xlu0 %v5215_v18, %s4509_s29 }
0x1213   : > { %v2326_v26 = vpop.xlane.xlu0 %2325 }
0x1214   : > { %v2327_v27 = vsub.f32 %v2320_v22, %v2326_v26 }
0x1216   : > { %v2328_v28 = vmul.f32 1.442695, %v2327_v27  ;;  %v3656_v27 = vld [vmem:[%s5480_s5 + $0x38] sm:$0xff] }
0x1217   : > { %v2412_v36 = vpop.permute.xlu0 %2411 }
0x1218   : > { %4419 = vpow2.f32 %v2328_v28 }
0x1222   : > { %v4420_v30 = vpop.eup %4419 }
0x1223   : > { %v2330_v31 = vsel %vm958_vm2, %v4420_v30, 0.0 }
0x1224   : > { %2331 = vadd.xlane.f32.xlu1 %v2330_v31 }
0x1235   : > { %2413 = vrot.lane.b32.xlu1 %v5215_v18, %s5523_s26  ;;  %s5530_s26 = smov 40  }
0x12b1   : > { %v2332_v32 = vpop.xlane.xlu1 %2331 }
0x12b2   : > { %4421 = vrcp.f32 %v2332_v32 }
0x12b5   : > { %v2414_v35 = vpop.permute.xlu1 %2413 }
0x12bc   : > { %v4422_v33 = vpop.eup %4421 }
0x12bd   : > { %v2334_v34 = vmul.f32 %v4422_v33, %v4420_v30 }
0x12bf   : > { %4062 = vmatmul.mubr.msk.f32.vlgmr.msra.gmra.mrb[18].mxu0 %vm958_vm2, %v2334_v34 }
0x12c0   : > { %4065 = vmatpush3.xpose.msk.msra.mxu0 %vm958_vm2, %v2414_v35  ;;  %4066 = vmatprep.mubr.msk.f32.mxu0 %vm4504_vm0, %v4505_v29 }
0x12c1   : > { %4069 = vmatprep.subr.mxu0 %v4505_v29 }
0x12c3   : > { %4067 = vmatmul.mubr.msk.f32.vlgmr.msra.gmra.mrb[20].mxu0 %vm958_vm2, %v2412_v36 }
0x12c4   : > { %4071 = vmatprep.mubr.msk.f32.mxu0 %vm4504_vm0, %v4505_v29 }
0x1392   : > { %v2407_v38 = vpop.f32.mrb[18].mxu0 }
0x1393   : > { %v4063_v39 = vpop.f32.mrb[19].mxu0  ;;  %4082 = vmatmul.mubr.msk.f32.vlgmr.msra.gmra.mrb[22].mxu1 %vm958_vm2, %v2407_v38 }
0x1394   : > { %4091 = vmatprep.mubr.msk.f32.mxu1 %vm4504_vm0, %v4505_v29 }
0x1396   : > { %v2485_v40 = vpop.f32.mrb[20].mxu0 }
0x1397   : > { %v4068_v41 = vpop.f32.mrb[21].mxu0  ;;  %v2489_v43 = vsel %vm958_vm2, %v2485_v40, -inf }
0x1398   : > { %2490 = vmax.xlane.f32.xlu1 %v2489_v43 }
0x13a9   : > { %2500 = vrot.lane.b32.xlu1 %v5215_v18, %s5524_s16 }
0x13ad   : > { %2722 = vrot.lane.b32.xlu1 %v5215_v18, %s5525_s21  ;;  %s5531_s21 = sld [smem:[#allocation13_spill]] }
0x1425   : > { %v2491_v44 = vpop.xlane.xlu1 %2490 }
0x1426   : > { %v2492_v46 = vsub.f32 %v2485_v40, %v2491_v44 }
0x1428   : > { %v2493_v47 = vmul.f32 1.442695, %v2492_v46 }
0x1429   : > { %v2501_v48 = vpop.permute.xlu1 %2500 }
0x142a   : > { %4423 = vpow2.f32 %v2493_v47  ;;  %4070 = vmatpush3.msra.mxu0 %v2501_v48 }
0x142b   : > { %4074 = vmatprep.subr.mxu0 %v4505_v29 }
0x142d   : > { %v2723_v59 = vpop.permute.xlu1 %2722 }
0x1434   : > { %v4424_v49 = vpop.eup %4423 }
0x1435   : > { %v2495_v50 = vsel %vm958_vm2, %v4424_v49, 0.0 }
0x1436   : > { %2496 = vadd.xlane.f32.xlu0 %v2495_v50  ;;  %v3679_v50 = vld [vmem:[%s5482_s7 + $0x20] sm:$0xff] }
0x144c   : > { %2724 = vrot.lane.b32.xlu0 %v5215_v18, %s5526_s19  ;;  %s3711_s19 = sshll.u32 %s4629_s28, 7  ;;  %s4517_s28 = smov [#allocation2]  }
0x1466   : > { %v2718_v51 = vpop.f32.mrb[22].mxu1 }
0x1467   : > { %v4083_v52 = vpop.f32.mrb[23].mxu1 }
0x14c3   : > { %v2497_v53 = vpop.xlane.xlu0 %2496 }
0x14c4   : > { %4425 = vrcp.f32 %v2497_v53  ;;  %v3682_v53 = vld [vmem:[%s5482_s7 + $0x38] sm:$0xff] }
0x14c7   : > { %v2725_v57 = vpop.permute.xlu0 %2724 }
0x14ce   : > { %v4426_v45 = vpop.eup %4425 }
0x14cf   : > { %v2499_v54 = vmul.f32 %v4426_v45, %v4424_v49 }
0x14d1   : > { %4072 = vmatmul.mubr.msk.f32.vlgmr.msra.gmra.mrb[22].mxu0 %vm958_vm2, %v2499_v54  ;;  %v3686_v54 = vld [vmem:[%s5484_s9 + $0x80] sm:$0xff] }
0x14d2   : > { %4075 = vmatpush3.msra.mxu0 %v3654_v55  ;;  %4076 = vmatprep.mubr.msk.f32.mxu0 %vm4504_vm0, %v4505_v29  ;;  %v3687_v55 = vld [vmem:[%s5484_s9 + $0x88] sm:$0xff] }
0x14d3   : > { %4084 = vmatprep.subr.mxu0 %v4505_v29 }
0x15a4   : > { %v2572_v56 = vpop.f32.mrb[22].mxu0 }
0x15a5   : > { %v4073_v58 = vpop.f32.mrb[23].mxu0  ;;  %4077 = vmatmul.mubr.msk.f32.vlgmr.msra.gmra.mrb[24].mxu0 %vm958_vm2, %v2572_v56  ;;  %v3688_v56 = vld [vmem:[%s5484_s9 + $0x90] sm:$0xff] }
0x15a6   : > { %4085 = vmatpush3.xpose.msk.msra.mxu0 %vm958_vm2, %v2725_v57  ;;  %4086 = vmatprep.mubr.msk.f32.mxu0 %vm4504_vm0, %v4505_v29  ;;  %v4316_v57 = vpack.c.bf16 %v3687_v55, %v3686_v54  ;;  %v3689_v58 = vld [vmem:[%s5484_s9 + $0x98] sm:$0xff]  ;;  %v3708_v54 = vld [vmem:[%s5531_s21] ss:$0 sm:$0xff] }
0x15a7   : > { %4094 = vmatprep.subr.mxu0 %v4505_v29 }
0x15a9   : > { %4087 = vmatmul.mubr.msk.f32.vlgmr.msra.gmra.mrb[26].mxu0 %vm958_vm2, %v2723_v59  ;;  %v4319_v59 = vpack.c.bf16 %v3689_v58, %v3688_v56 }
0x15aa   : > { %4096 = vmatprep.mubr.msk.f32.mxu0 %vm4504_vm0, %v4505_v29  ;;  %4095 = vmatpush3.msra.mxu0 %v3655_v12 }
0x15ab   : > { %4104 = vmatprep.subr.mxu0 %v4505_v29 }
0x1678   : > { %v2645_v60 = vpop.f32.mrb[24].mxu0 }
0x1679   : > { %v2719_v61 = vadd.f32 %v2718_v51, %v2645_v60  ;;  %v4078_v62 = vpop.f32.mrb[25].mxu0  ;;  %v3680_v51 = vld [vmem:[%s5482_s7 + $0x28] sm:$0xff]  ;;  %v3690_v60 = vld [vmem:[%s5484_s9 + $0xa0] sm:$0xff] }
0x167a   : > { %v4310_v52 = vpack.c.bf16 %v3680_v51, %v3679_v50 }
0x167c   : > { %v2796_v63 = vpop.f32.mrb[26].mxu0 }
0x167d   : > { %v4088_v0 = vpop.f32.mrb[27].mxu0  ;;  %v2800_v1 = vsel %vm958_vm2, %v2796_v63, -inf }
0x167e   : > { %2801 = vmax.xlane.f32.xlu1 %v2800_v1  ;;  %v3693_v0 = vld [vmem:[%s5484_s9 + $0xb8] sm:$0xff] }
0x168f   : > { %2811 = vrot.lane.b32.xlu1 %v5215_v18, %s5527_s27 }
0x1693   : > { %2961 = vrot.lane.b32.xlu1 %v5215_v18, %s5528_s30 }
0x170b   : > { %v2802_v2 = vpop.xlane.xlu1 %2801 }
0x170c   : > { %v2803_v3 = vsub.f32 %v2796_v63, %v2802_v2  ;;  %v3692_v63 = vld [vmem:[%s5484_s9 + $0xb0] sm:$0xff]  ;;  %v3694_v2 = vld [vmem:[%s5484_s9 + $0xc0] sm:$0xff] }
0x170d   : > { %v4325_v1 = vpack.c.bf16 %v3693_v0, %v3692_v63 }
0x170e   : > { %v2804_v4 = vmul.f32 1.442695, %v2803_v3  ;;  %v3695_v3 = vld [vmem:[%s5484_s9 + $0xc8] sm:$0xff] }
0x170f   : > { %v2812_v5 = vpop.permute.xlu1 %2811 }
0x1710   : > { %4427 = vpow2.f32 %v2804_v4  ;;  %4090 = vmatpush3.msra.mxu1 %v2812_v5  ;;  %v4328_v4 = vpack.c.bf16 %v3695_v3, %v3694_v2  ;;  %v3696_v5 = vld [vmem:[%s5484_s9 + $0xd0] sm:$0xff] }
0x1711   : > { %4099 = vmatprep.subr.mxu1 %v4505_v29 }
0x1713   : > { %v2962_v42 = vpop.permute.xlu1 %2961 }
0x171a   : > { %v4428_v6 = vpop.eup %4427 }
0x171b   : > { %v2806_v7 = vsel %vm958_vm2, %v4428_v6, 0.0 }
0x171c   : > { %2807 = vadd.xlane.f32.xlu0 %v2806_v7 }
0x1732   : > { %2963 = vrot.lane.b32.xlu0 %v5215_v18, %s5529_s22  ;;  %s5532_s22 = sld [smem:[#allocation14_spill]] }
0x1738   : > { %s5432_s18 = scalar_lea.hbm %s5532_s22, %s3711_s19 }
0x17a9   : > { %v2808_v8 = vpop.xlane.xlu0 %2807 }
0x17aa   : > { %4429 = vrcp.f32 %v2808_v8  ;;  %v3698_v8 = vld [vmem:[%s5484_s9 + $0xe0] sm:$0xff] }
0x17ad   : > { %v2964_v11 = vpop.permute.xlu0 %2963 }
0x17b4   : > { %v4430_v9 = vpop.eup %4429 }
0x17b5   : > { %v2810_v10 = vmul.f32 %v4430_v9, %v4428_v6  ;;  %v3697_v6 = vld [vmem:[%s5484_s9 + $0xd8] sm:$0xff]  ;;  %v3699_v9 = vld [vmem:[%s5484_s9 + $0xe8] sm:$0xff] }
0x17b6   : > { %v4331_v7 = vpack.c.bf16 %v3697_v6, %v3696_v5 }
0x17b7   : > { %4092 = vmatmul.mubr.msk.f32.vlgmr.msra.gmra.mrb[24].mxu1 %vm958_vm2, %v2810_v10  ;;  %v4334_v10 = vpack.c.bf16 %v3699_v9, %v3698_v8 }
0x17b8   : > { %4100 = vmatpush3.xpose.msk.msra.mxu1 %vm958_vm2, %v2964_v11  ;;  %4101 = vmatprep.mubr.msk.f32.mxu1 %vm4504_vm0, %v4505_v29 }
0x17b9   : > { %4109 = vmatprep.subr.mxu1 %v4505_v29 }
0x17bb   : > { %4102 = vmatmul.mubr.msk.f32.vlgmr.msra.gmra.mrb[26].mxu1 %vm958_vm2, %v2962_v42 }
0x17bc   : > { %4111 = vmatprep.mubr.msk.f32.mxu1 %vm4504_vm0, %v4505_v29  ;;  %4110 = vmatpush3.msra.mxu1 %v3656_v27 }
0x17bd   : > { %4315 = vmatprep.subr.bf16.mxu1 %v4503_v24 }
0x188a   : > { %v2883_v13 = vpop.f32.mrb[24].mxu1 }
0x188b   : > { %v4093_v14 = vpop.f32.mrb[25].mxu1  ;;  %4097 = vmatmul.mubr.msk.f32.vlgmr.msra.gmra.mrb[28].mxu0 %vm958_vm2, %v2883_v13 }
0x188c   : > { %4106 = vmatprep.mubr.msk.f32.mxu0 %vm4504_vm0, %v4505_v29  ;;  %v3677_v14 = vld [vmem:[%s5486_s11 + $0x1] ss:$0 sm:$0xff] }
0x188e   : > { %v3035_v16 = vpop.f32.mrb[26].mxu1 }
0x188f   : > { %v4103_v17 = vpop.f32.mrb[27].mxu1  ;;  %v3039_v19 = vsel %vm958_vm2, %v3035_v16, -inf }
0x1890   : > { %3040 = vmax.xlane.f32.xlu1 %v3039_v19  ;;  %v3678_v17 = vld [vmem:[%s5487_s12 + $0x1] ss:$0 sm:$0xff] }
0x18a1   : > { %3050 = vrot.lane.b32.xlu1 %v5215_v18, %s5530_s26  ;;  %s539_s26 = sand.u32 1, %s4493_s25  }
0x18a2   : > { %s3617_s17 = sshll.u32 %s539_s26, 3  ;;  %s3541_s20 = scalar_lea.sflag [#allocation3], %s539_s26 }
0x18a3   : > { %s541_s0 = scalar_lea.vmem [#allocation2], %s3617_s17  ;;  %s4443_s17 = sshll.u32 %s4517_s28, 4  ;;  %s4444_s17 = int_to_ptr.vmem [resolvable:$false] %s4443_s17 }
0x18a4   : > { %s3554_s24 = sshll.u32 %s541_s0, 4  ;;  %s4445_s16 = scalar_lea.vmem %s4444_s17, 256  ;;  %s5434_s24 = int_to_ptr.vmem [resolvable:$true] %s3554_s24 }
0x18a5   : > { %s4439_s29 = scalar_lea.vmem %s5434_s24, 128  ;;  %p4446_p0 = scmp.lt.s32.totalorder %s5434_s24, %s4444_s17 }
0x18a6   : > { %p4440_p11 = scmp.ne.s32.totalorder %s5434_s24, %s4439_s29  ;;  %p4447_p1 = scmp.lt.s32.totalorder %s4445_s16, %s4439_s29 }
0x18a8   : > { %p4441_p12 = pnand %p4440_p11, %p4646_p5  ;;  %p4448_p2 = por %p4447_p1, %p4446_p0 }
0x18aa   : > { %p4442_p13 = pneg %p4441_p12 }
0x18ac   : > { %p4449_p3 = pnand %p4448_p2, %p4442_p13 }
0x191d   : > { %v3041_v20 = vpop.xlane.xlu1 %3040 }
0x191e   : > { %v3042_v21 = vsub.f32 %v3035_v16, %v3041_v20 }
0x1920   : > { %v3043_v22 = vmul.f32 1.442695, %v3042_v21  ;;  %v3700_v21 = vld [vmem:[%s5484_s9 + $0xf0] sm:$0xff] }
0x1921   : > { %v3051_v23 = vpop.permute.xlu1 %3050 }
0x1922   : > { %4431 = vpow2.f32 %v3043_v22  ;;  %4105 = vmatpush3.msra.mxu0 %v3051_v23  ;;  %v3701_v22 = vld [vmem:[%s5484_s9 + $0xf8] sm:$0xff] }
0x1923   : > { %4309 = vmatprep.subr.bf16.mxu0 %v4503_v24  ;;  %v4337_v23 = vpack.c.bf16 %v3701_v22, %v3700_v21 }
0x192c   : > { %v4432_v25 = vpop.eup %4431 }
0x192d   : > { %v3045_v26 = vsel %vm958_vm2, %v4432_v25, 0.0 }
0x192e   : > { %3046 = vadd.xlane.f32.xlu0 %v3045_v26 }
0x195e   : > { %v2956_v18 = vpop.f32.mrb[28].mxu0 }
0x195f   : > { %v2960_v28 = vadd.f32 %v2956_v18, %v2719_v61  ;;  %v4098_v30 = vpop.f32.mrb[29].mxu0  ;;  %v3691_v61 = vld [vmem:[%s5484_s9 + $0xa8] sm:$0xff] }
0x1960   : > { %v4322_v62 = vpack.c.bf16 %v3691_v61, %v3690_v60 }
0x19bb   : > { %v3047_v31 = vpop.xlane.xlu0 %3046 }
0x19bc   : > { %4433 = vrcp.f32 %v3047_v31 }
0x19c6   : > { %v4434_v32 = vpop.eup %4433 }
0x19c7   : > { %v3049_v33 = vmul.f32 %v4434_v32, %v4432_v25  ;;  %v3684_v25 = vld [vmem:[%s5483_s8 + $0x1] ss:$0 sm:$0xff] }
0x19c9   : > { %4107 = vmatmul.mubr.msk.f32.vlgmr.msra.gmra.mrb[30].mxu0 %vm958_vm2, %v3049_v33 }
0x19ca   : > { %4122 = vmatprep.mubr.msk.f32.mxu0 %vm4504_vm0, %v4505_v29  ;;  %4311 = vmatpush3.bf16.msra.mxu0 %v4310_v52 }
0x19cb   : > { %4312 = vmatprep.subr.bf16.mxu0 %v4503_v24 }
0x1a9c   : > { %v3122_v34 = vpop.f32.mrb[30].mxu0 }
0x1a9d   : > { %v4108_v35 = vpop.f32.mrb[31].mxu0  ;;  %4112 = vmatmul.mubr.msk.f32.vlgmr.msra.gmra.mrb[28].mxu1 %vm958_vm2, %v3122_v34 }
0x1a9e   : > { %4157 = vmatprep.mubr.msk.f32.mxu1 %vm4504_vm0, %v4505_v29  ;;  %4317 = vmatpush3.bf16.msra.mxu1 %v4316_v57 }
0x1a9f   : > { %4318 = vmatprep.subr.bf16.mxu1 %v4503_v24 }
0x1aa2   : > { %4320 = vmatpush3.bf16.msra.mxu1 %v4319_v59 }
0x1aa3   : > { %4321 = vmatprep.subr.bf16.mxu1 %v4503_v24 }
0x1aa6   : > { %4323 = vmatpush3.bf16.msra.mxu1 %v4322_v62 }
0x1aa7   : > { %4324 = vmatprep.subr.bf16.mxu1 %v4503_v24 }
0x1aaa   : > { %4326 = vmatpush3.bf16.msra.mxu1 %v4325_v1 }
0x1aab   : > { %4327 = vmatprep.subr.bf16.mxu1 %v4503_v24 }
0x1aae   : > { %4329 = vmatpush3.bf16.msra.mxu1 %v4328_v4 }
0x1aaf   : > { %4330 = vmatprep.subr.bf16.mxu1 %v4503_v24 }
0x1ab2   : > { %4332 = vmatpush3.bf16.msra.mxu1 %v4331_v7 }
0x1ab3   : > { %4333 = vmatprep.subr.bf16.mxu1 %v4503_v24 }
0x1ab6   : > { %4335 = vmatpush3.bf16.msra.mxu1 %v4334_v10 }
0x1ab7   : > { %4336 = vmatprep.subr.bf16.mxu1 %v4503_v24 }
0x1aba   : > { %4338 = vmatpush3.bf16.msra.mxu1 %v4337_v23 }
0x1b70   : > { %v3195_v36 = vpop.f32.mrb[28].mxu1 }
0x1b71   : > { %v3199_v38 = vadd.f32 %v3195_v36, %v2960_v28  ;;  %v4113_v39 = vpop.f32.mrb[29].mxu1 }
0x1b73   : > { %v3208_v40 = vadd.f32 %v3674_v37, %v3199_v38 }
0x1b75   : > { %v3209_v41 = vadd.f32 %v3208_v40, %v5206_v15  ;;  %v3681_v15 = vld [vmem:[%s5482_s7 + $0x30] sm:$0xff]  ;;  %v3455_v40 = vld [vmem:[%s5490_s15] sm:$0xff] }
0x1b76   : > { %v4313_v45 = vpack.c.bf16 %v3682_v53, %v3681_v15  ;;  %v3707_v15 = vld [vmem:[%s5489_s14 + $0x1] ss:$0 sm:$0xff] }
0x1b77   : > { %v3214_v43 = vsel %vm877_vm1, %v3209_v41, 0.0 }
0x1b78   : > { %3215 = vadd.xlane.f32.xlu0 %v3214_v43  ;;  %4314 = vmatpush3.bf16.msra.mxu0 %v4313_v45 }
0x1b79   : > { %4339 = vmatprep.subr.bf16.mxu0 %v4503_v24 }
0x1c05   : > { %v3216_v44 = vpop.xlane.xlu0 %3215 }
0x1c06   : > { %v3217_v46 = vmul.f32 0.03125, %v3216_v44  ;;  %v3457_v44 = vld [vmem:[%s5490_s15 + $0x10] sm:$0xff] }
0x1c08   : > { %v3218_v47 = vsub.f32 %v3209_v41, %v3217_v46  ;;  %v3456_v41 = vld [vmem:[%s5490_s15 + $0x8] sm:$0xff]  ;;  %v3458_v46 = vld [vmem:[%s5490_s15 + $0x18] sm:$0xff] }
0x1c09   : > { %v4340_v43 = vpack.c.bf16 %v3456_v41, %v3455_v40 }
0x1c0a   : > { %v3219_v48 = vmul.f32 %v3218_v47, %v3218_v47 }
0x1c0c   : > { %v3220_v49 = vsel %vm877_vm1, %v3219_v48, 0.0 }
0x1c0d   : > { %3221 = vadd.xlane.f32.xlu0 %v3220_v49 }
0x1c9a   : > { %v3222_v11 = vpop.xlane.xlu0 %3221 }
0x1c9b   : > { %v3223_v42 = vmul.f32 0.03125, %v3222_v11 }
0x1c9d   : > { %v3224_v12 = vadd.f32 1e-05, %v3223_v42 }
0x1c9f   : > { %4435 = vrsqrt.f32 %v3224_v12 }
0x1ca9   : > { %v4436_v13 = vpop.eup %4435 }
0x1caa   : > { %v3226_v16 = vmul.f32 %v4436_v13, %v3218_v47  ;;  %v4343_v47 = vpack.c.bf16 %v3458_v46, %v3457_v44 }
0x1cac   : > { %v3233_v19 = vmul.f32 %v3677_v14, %v3226_v16 }
0x1cae   : > { %v3240_v20 = vadd.f32 %v3678_v17, %v3233_v19 }
0x1cb0   : > { %4123 = vmatmul.mubr.msk.f32.vlgmr.msra.gmra.mrb[32].mxu0 %vm877_vm1, %v3240_v20 }
0x1cb1   : > { %4168 = vmatprep.mubr.msk.f32.mxu0 %vm4504_vm0, %v4505_v29  ;;  %v3703_v29 = vld [vmem:[%s5485_s10 + $0x1] ss:$0 sm:$0xff]  ;;  %4341 = vmatpush3.bf16.msra.mxu0 %v4340_v43 }
0x1cb2   : > { %4342 = vmatprep.subr.bf16.mxu0 %v4503_v24  ;;  %v3706_v24 = vld [vmem:[%s5488_s13 + $0x1] ss:$0 sm:$0xff] }
0x1cb5   : > { %4344 = vmatpush3.bf16.msra.mxu0 %v4343_v47 }
0x1d83   : > { %v3323_v26 = vpop.f32.mrb[32].mxu0 }
0x1d84   : > { %v3324_v27 = vadd.f32 %v3684_v25, %v3323_v26  ;;  %v4124_v18 = vpop.f32.mrb[33].mxu0 }
0x1d86   : > { %v3327_v28 = vmax.f32 %v3324_v27, 0.0 }
0x1d88   : > { %4158 = vmatmul.mubr.f32.vlgmr.msra.gmra.mrb[30].mxu1 %v3327_v28 }
0x1e5b   : > { %v3419_v30 = vpop.f32.mrb[30].mxu1 }
0x1e5c   : > { %v3420_v31 = vadd.f32 %v3703_v29, %v3419_v30  ;;  %v4159_v32 = vpop.f32.mrb[31].mxu1 }
0x1e5e   : > { %v3423_v33 = vadd.f32 %v3420_v31, %v3240_v20 }
0x1e60   : > { %v3428_v34 = vsel %vm877_vm1, %v3423_v33, 0.0 }
0x1e61   : > { %3429 = vadd.xlane.f32.xlu0 %v3428_v34 }
0x1eee   : > { %v3430_v35 = vpop.xlane.xlu0 %3429 }
0x1eef   : > { %v3431_v36 = vmul.f32 0.03125, %v3430_v35 }
0x1ef1   : > { %v3432_v37 = vsub.f32 %v3423_v33, %v3431_v36 }
0x1ef3   : > { %v3433_v38 = vmul.f32 %v3432_v37, %v3432_v37 }
0x1ef5   : > { %v3434_v39 = vsel %vm877_vm1, %v3433_v38, 0.0 }
0x1ef6   : > { %3435 = vadd.xlane.f32.xlu1 %v3434_v39 }
0x1f83   : > { %v3436_v48 = vpop.xlane.xlu1 %3435 }
0x1f84   : > { %v3437_v49 = vmul.f32 0.03125, %v3436_v48 }
0x1f86   : > { %v3438_v50 = vadd.f32 1e-05, %v3437_v49 }
0x1f88   : > { %4437 = vrsqrt.f32 %v3438_v50 }
0x1f92   : > { %v4438_v51 = vpop.eup %4437 }
0x1f93   : > { %v3440_v52 = vmul.f32 %v4438_v51, %v3432_v37 }
0x1f95   : > { %v3447_v53 = vmul.f32 %v3706_v24, %v3440_v52 }
0x1f97   : > { %v3454_v45 = vadd.f32 %v3707_v15, %v3447_v53 }
0x1f99   : > { %4169 = vmatmul.mubr.msk.f32.vlgmr.msra.gmra.mrb[34].mxu0 %vm877_vm1, %v3454_v45 }
0x206c   : > { %v3535_v55 = vpop.f32.mrb[34].mxu0 }
0x206d   : > { %v3536_v56 = vadd.f32 %v3708_v54, %v3535_v55  ;;  %v4170_v57 = vpop.f32.mrb[35].mxu0 }
0x206f   : > { %3539 = vst.msk [vmem:[%s541_s0] sm:$0xff] %vm877_vm1, %v3536_v56 }
0x2070   : > { %4452 = shalt.err (!%p4449_p3)
}
0x2071   : > { %s4453_s26 = scalar_lea.hbm %s5432_s18, 128  ;;  %s4457_s0 = scalar_lea.hbm %s5532_s22, 256 }
0x2072   : > { %p4454_p4 = scmp.ne.s32.totalorder %s5432_s18, %s4453_s26  ;;  %p4458_p9 = scmp.lt.u32.totalorder %s5432_s18, %s5532_s22 }
0x2073   : > { %p4459_p10 = scmp.lt.u32.totalorder %s4457_s0, %s4453_s26  ;;  %p4461_p12 = scmp.lt.u32.totalorder %s4453_s26, %s5432_s18 }
0x2074   : > { %p4455_p7 = pnand %p4454_p4, %p4646_p5 }
0x2075   : > { %p4460_p11 = por %p4459_p10, %p4458_p9 }
0x2076   : > { %p4456_p8 = pneg %p4455_p7 }
0x2077   : > { %p4462_p13 = por %p4461_p12, %p4460_p11 }
0x2079   : > { %p4463_p0 = pnand %p4462_p13, %p4456_p8 }
0x207b   : > { %4466 = shalt.err (!%p4463_p0)
}
0x207c   : > { %4346 = dma.vmem_to_hbm [thread:$0]  (%p4646_p5), %s5434_s24, 128, %s5432_s18, %s3541_s20  }
0x207d PF: > { %s5533_s29 = sld [smem:[#allocation7_spill]]  ;;  %s5534_s28 = sld [smem:[#allocation5_spill]] }
0x2083   : > { %p4352_p1 = scmp.ge.s32.totalorder %s5533_s29, 2  ;;  %s3566_s16 = sand.u32 1, %s5534_s28  }
0x2084   : > { %s3567_s21 = scalar_lea.sflag [#allocation3], %s3566_s16 }
0x2085   : > { %p4349_p2 = pnand %p4352_p1, %p4650_p6 }
0x2087   : > { %4484 = dma.done.wait (!%p4349_p2), %s3567_s21, 128  }
0x2088   : > { %4486 = vsyncadd (!%p4349_p2), %s3567_s21, 4294967168  ;;  %s5536_s27 = sld [smem:[#allocation8_spill]]  ;;  %s5537_s26 = sld [smem:[#allocation6_spill]] }
0x2089   : > { %s5538_s19 = sld [smem:[#allocation9_spill]]  ;;  %s5539_s24 = smov %s4493_s25 }
0x208e   : > { %p27_p3 = scmp.ge.s32.totalorder %s5536_s27, 4   ;;  %s5540_s25 = smov %s5537_s26 }
0x208f   : > { %s5541_s26 = smov %s5538_s19 }
0x2090   :  { %29 = sbr.rel (!%p27_p3) target bundleno = 8 (0x8), region = 135 }
0x2097   :  { %3572 = vsyncpa [#allocation3], 1 }
0x2098   :  { %3574 = vsyncpa [#allocation3 + $0x1], 1 }

</bundles_post_ra>
